<compile_context>
chip_gen: v7x
topology: tpu7x:2x2x1
jax: 0.10.0
libtpu: 0.0.40
codegen_flags: <defaults>
</compile_context>

<pallas_src>
import functools

import jax
import jax.numpy as jnp
from jax import lax
from jax.experimental import pallas as pl
from jax.experimental.pallas import tpu as pltpu


def _round_up(x, m):
    return ((x + m - 1) // m) * m


def _vmem_capacity_bytes():
    try:
        return int(pltpu.get_tpu_info().vmem_capacity_bytes)
    except Exception:
        return 64 * 1024 * 1024  # conservative default (v7x has 64 MiB / TC)


def _pick_h_tile(h_out, w_out, cap_rows):
    """Divisor tile_h of h_out with (tile_h*w_out) % 8 == 0; largest under cap."""
    cands = [th for th in range(1, h_out + 1)
             if h_out % th == 0 and (th * w_out) % 8 == 0]
    if not cands:
        return h_out  # TODO(synk): odd H_out*W_out falls back to one full band
    fitting = [th for th in cands if th * w_out <= cap_rows]
    return max(fitting) if fitting else min(cands)


def _pick_hw_tile(hw, cap):
    """Largest multiple-of-128 divisor of hw that fits cap (else hw itself)."""
    best = 0
    t = 128
    lim = min(hw, cap)
    while t <= lim:
        if hw % t == 0:
            best = t
        t += 128
    # TODO(synk): for HW with no mult-of-128 divisor, pad + masked tail instead.
    return best if best else hw


# ---------------------------------------------------------------------------
# Kernel 1: direct conv with the k*k taps folded into ONE MXU matmul per tile
# (in-VMEM gather of shifted windows -> (tile_hw, k*k*Cin) LHS), f32
# accumulation, bf16 output, plus per-(sample, band) BN statistics.
# Grid: (batch, Cout tiles, row bands) -- all axes parallel.
# ---------------------------------------------------------------------------
def _conv_stats_kernel(x_ref, w_ref, y_ref, sum_ref, sq_ref, *,
                       ksize, tile_h, w_out, cin, n_h):
    if n_h > 1:
        h0 = pl.program_id(2) * tile_h
    else:
        h0 = 0
    taps = []
    for kh in range(ksize):
        for kw in range(ksize):
            taps.append(x_ref[0, pl.ds(h0 + kh, tile_h), pl.ds(kw, w_out), :])
    # One-time per-tile im2col gather in VMEM (lane concat), then a single
    # matmul with contraction depth k*k*Cin (fills the MXU K dim).
    lhs = taps[0] if len(taps) == 1 else jnp.concatenate(taps, axis=-1)
    lhs = lhs.reshape(tile_h * w_out, ksize * ksize * cin)
    acc = jnp.dot(lhs, w_ref[...], preferred_element_type=jnp.float32)
    y_ref[...] = acc[None].astype(y_ref.dtype)          # bf16 intermediate
    sum_ref[...] = jnp.sum(acc, axis=0)[None, None, None, :]
    sq_ref[...] = jnp.sum(acc * acc, axis=0)[None, None, None, :]


# ---------------------------------------------------------------------------
# Kernel 2a: BN affine + activation (no mixup).  Writes NCHW directly via an
# in-kernel transpose (XLU is idle here), dropping channel padding in-kernel.
# ---------------------------------------------------------------------------
def _bn_act_kernel(y_ref, s_ref, b_ref, o_ref, *, c_out, out_relu, leaky):
    out = y_ref[...].astype(jnp.float32) * s_ref[...] + b_ref[...]
    if out_relu:
        out = jnp.where(out > 0, out, 0.1 * out) if leaky else jnp.maximum(out, 0.0)
    o_ref[...] = jnp.transpose(out[0], (1, 0))[None, :c_out, :].astype(o_ref.dtype)


# ---------------------------------------------------------------------------
# Kernel 2b: BN affine + mixup (permuted sample fetched via scalar-prefetched
# `perm` in the index_map; lbda pre-folded into the scales) + activation.
# ---------------------------------------------------------------------------
def _bn_mix_act_kernel(perm_ref, y_ref, yp_ref, sa_ref, sb_ref, sh_ref, o_ref,
                       *, c_out, out_relu, leaky):
    del perm_ref  # only used by the index_maps
    out = (y_ref[...].astype(jnp.float32) * sa_ref[...]
           + yp_ref[...].astype(jnp.float32) * sb_ref[...] + sh_ref[...])
    if out_relu:
        out = jnp.where(out > 0, out, 0.1 * out) if leaky else jnp.maximum(out, 0.0)
    o_ref[...] = jnp.transpose(out[0], (1, 0))[None, :c_out, :].astype(o_ref.dtype)


class ConvBN2dPallas:
    """Pallas re-implementation of the PyTorch ConvBN2d module (train-mode BN)."""

    def __init__(self, in_f, out_f, kernel_size=3, stride=1, padding=1,
                 groups=1, outRelu=False, leaky=True, key=None):
        assert groups == 1  # TODO(synk): grouped conv not implemented
        self.in_f, self.out_f = in_f, out_f
        self.k, self.stride, self.padding = kernel_size, stride, padding
        self.outRelu, self.leaky = outRelu, leaky
        self.eps = 1e-5

        key = jax.random.PRNGKey(0) if key is None else key
        # kaiming_normal_(mode='fan_out', nonlinearity='leaky_relu') semantics.
        fan_out = out_f * kernel_size * kernel_size
        gain = (2.0 / (1.0 + 0.01 ** 2)) ** 0.5
        std = gain / (fan_out ** 0.5)
        self.w = std * jax.random.normal(
            key, (out_f, in_f, kernel_size, kernel_size), dtype=jnp.float32)
        self.gamma = jnp.ones((out_f,), jnp.float32)
        self.beta = jnp.zeros((out_f,), jnp.float32)

    def __call__(self, x, lbda=None, perm=None):
        # x: NCHW float32
        N, Cin, H, W = x.shape
        k, s, p, Cout = self.k, self.stride, self.padding, self.out_f
        H_out = (H + 2 * p - k) // s + 1
        W_out = (W + 2 * p - k) // s + 1
        HW = H_out * W_out

        Cpad = _round_up(Cout, 128)
        # 256-wide N matches the v6e/v7x MXU; on v5e 128 would halve VMEM with
        # no throughput loss (not distinguishable from VMEM capacity alone).
        tile_co = 256 if Cpad % 256 == 0 else 128
        n_co = Cpad // tile_co

        # Per-generation VMEM budgeting (v7x = 64 MiB is the tight case).
        vmem_cap = _vmem_capacity_bytes()
        big_vmem = vmem_cap >= 100 * 1024 * 1024            # v5e / v6e (128 MiB)
        vmem_limit = (64 if big_vmem else 32) * 1024 * 1024
        acc_budget = (4 if big_vmem else 2) * 1024 * 1024    # f32 acc per step
        k2_budget = (8 if big_vmem else 4) * 1024 * 1024     # f32 tile, kernel 2

        # --- glue: NCHW -> padded NHWC bf16; weight -> (k*k*Cin, Cpad) bf16 ----
        x_nhwc = jnp.transpose(x, (0, 2, 3, 1))
        xp = jnp.pad(x_nhwc, ((0, 0), (p, p), (p, p), (0, 0))).astype(jnp.bfloat16)
        if s == 1:
            x_in, k_eff, cin_eff = xp, k, Cin
        else:
            # TODO(synk): stride>1 materializes the tap windows in HBM (wrapper
            # space-to-depth) to avoid untested strided sublane reads in-kernel.
            taps = [xp[:, kh:kh + s * H_out:s, kw:kw + s * W_out:s, :]
                    for kh in range(k) for kw in range(k)]
            x_in, k_eff, cin_eff = jnp.concatenate(taps, axis=-1), 1, k * k * Cin
        KKC = k * k * Cin                                   # folded contraction K
        w_k = jnp.transpose(self.w, (2, 3, 1, 0)).reshape(KKC, Cout)
        w_k = jnp.pad(w_k, ((0, 0), (0, Cpad - Cout))).astype(jnp.bfloat16)

        # --- Pallas kernel 1: folded-tap conv + BN statistics ------------------
        tile_h = _pick_h_tile(H_out, W_out, max(8, acc_budget // (tile_co * 4)))
        n_h = H_out // tile_h
        tile_hw1 = tile_h * W_out
        _, Hin, Win, _ = x_in.shape

        kern1 = functools.partial(_conv_stats_kernel, ksize=k_eff, tile_h=tile_h,
                                  w_out=W_out, cin=cin_eff, n_h=n_h)
        y3, ysum, ysq = pl.pallas_call(
            kern1,
            out_shape=(jax.ShapeDtypeStruct((N, HW, Cpad), jnp.bfloat16),
                       jax.ShapeDtypeStruct((N, n_h, 1, Cpad), jnp.float32),
                       jax.ShapeDtypeStruct((N, n_h, 1, Cpad), jnp.float32)),
            grid_spec=pltpu.PrefetchScalarGridSpec(
                num_scalar_prefetch=0,
                grid=(N, n_co, n_h),   # row bands innermost; weight stays resident
                in_specs=[
                    pl.BlockSpec((1, Hin, Win, cin_eff),
                                 lambda n, c, t: (n, 0, 0, 0)),
                    pl.BlockSpec((KKC, tile_co), lambda n, c, t: (0, c)),
                ],
                out_specs=(
                    pl.BlockSpec((1, tile_hw1, tile_co),
                                 lambda n, c, t: (n, t, c)),
                    pl.BlockSpec((1, 1, 1, tile_co),
                                 lambda n, c, t: (n, t, 0, c)),
                    pl.BlockSpec((1, 1, 1, tile_co),
                                 lambda n, c, t: (n, t, 0, c)),
                )),
            compiler_params=pltpu.CompilerParams(
                dimension_semantics=("parallel", "parallel", "parallel"),
                vmem_limit_bytes=vmem_limit),
        )(x_in, w_k)

        # --- glue: finalize BN scale/shift from per-(sample, band) sums --------
        m = jnp.float32(N * HW)
        # TODO(synk): E[x^2]-E[x]^2 in f32 with a clamp; a Welford combine of the
        # per-band partials would be more robust for extreme |mean|/std ratios.
        mean = jnp.sum(ysum, axis=(0, 1, 2)) / m                     # (Cpad,)
        var = jnp.maximum(jnp.sum(ysq, axis=(0, 1, 2)) / m - mean * mean, 0.0)
        gamma = jnp.pad(self.gamma, (0, Cpad - Cout))    # pad channels -> scale 0
        beta = jnp.pad(self.beta, (0, Cpad - Cout))
        scale = gamma * lax.rsqrt(var + self.eps)
        shift = beta - mean * scale

        # --- Pallas kernel 2: BN affine (+ mixup) + activation, NCHW output ----
        tile_hw2 = _pick_hw_tile(HW, max(128, k2_budget // (Cpad * 4)))
        n_hw = HW // tile_hw2
        cparams2 = pltpu.CompilerParams(
            dimension_semantics=("parallel", "parallel"),
            vmem_limit_bytes=vmem_limit)
        out_shape2 = jax.ShapeDtypeStruct((N, Cout, HW), jnp.float32)

        if lbda is None:
            kern2 = functools.partial(_bn_act_kernel, c_out=Cout,
                                      out_relu=self.outRelu, leaky=self.leaky)
            out_nc = pl.pallas_call(
                kern2,
                out_shape=out_shape2,
                grid_spec=pltpu.PrefetchScalarGridSpec(
                    num_scalar_prefetch=0,
                    grid=(N, n_hw),
                    in_specs=[
                        pl.BlockSpec((1, tile_hw2, Cpad), lambda n, t: (n, t, 0)),
                        pl.BlockSpec((1, 1, Cpad), lambda n, t: (0, 0, 0)),
                        pl.BlockSpec((1, 1, Cpad), lambda n, t: (0, 0, 0)),
                    ],
                    out_specs=pl.BlockSpec((1, Cout, tile_hw2),
                                           lambda n, t: (n, 0, t))),
                compiler_params=cparams2,
            )(y3, scale.reshape(1, 1, Cpad), shift.reshape(1, 1, Cpad))
        else:
            perm_arr = (jnp.arange(N, dtype=jnp.int32) if perm is None
                        else jnp.asarray(perm, dtype=jnp.int32))
            sa = (lbda * scale).reshape(1, 1, Cpad)
            sb = ((1.0 - lbda) * scale).reshape(1, 1, Cpad)
            kern2 = functools.partial(_bn_mix_act_kernel, c_out=Cout,
                                      out_relu=self.outRelu, leaky=self.leaky)
            out_nc = pl.pallas_call(
                kern2,
                out_shape=out_shape2,
                grid_spec=pltpu.PrefetchScalarGridSpec(
                    num_scalar_prefetch=1,   # perm -> SMEM, used by the index_maps
                    grid=(N, n_hw),
                    in_specs=[
                        pl.BlockSpec((1, tile_hw2, Cpad),
                                     lambda n, t, pm: (n, t, 0)),
                        pl.BlockSpec((1, tile_hw2, Cpad),
                                     lambda n, t, pm: (pm[n], t, 0)),
                        pl.BlockSpec((1, 1, Cpad), lambda n, t, pm: (0, 0, 0)),
                        pl.BlockSpec((1, 1, Cpad), lambda n, t, pm: (0, 0, 0)),
                        pl.BlockSpec((1, 1, Cpad), lambda n, t, pm: (0, 0, 0)),
                    ],
                    out_specs=pl.BlockSpec((1, Cout, tile_hw2),
                                           lambda n, t, pm: (n, 0, t))),
                compiler_params=cparams2,
            )(perm_arr, y3, y3, sa, sb, shift.reshape(1, 1, Cpad))

        # Free, contiguous reshape -- no XLA slice/transpose epilogue.
        return out_nc.reshape(N, Cout, H_out, W_out)


# ---------------------------------------------------------------------------
# Pure-JAX reference (mirrors the PyTorch forward in training mode).
# ---------------------------------------------------------------------------
def reference(x, w, gamma, beta, lbda, perm, out_relu, leaky,
              stride, padding, eps=1e-5):
    y = lax.conv_general_dilated(
        x, w, (stride, stride), [(padding, padding), (padding, padding)],
        dimension_numbers=('NCHW', 'OIHW', 'NCHW'))
    mean = jnp.mean(y, axis=(0, 2, 3), keepdims=True)
    var = jnp.mean((y - mean) ** 2, axis=(0, 2, 3), keepdims=True)
    yb = ((y - mean) / jnp.sqrt(var + eps) * gamma.reshape(1, -1, 1, 1)
          + beta.reshape(1, -1, 1, 1))
    if lbda is not None:
        yb = lbda * yb + (1.0 - lbda) * yb[perm]
    if out_relu:
        yb = jnp.where(yb > 0, yb, 0.1 * yb) if leaky else jnp.maximum(yb, 0.0)
    return yb


if __name__ == "__main__":
    key = jax.random.PRNGKey(0)
    kx, kw1, kw2 = jax.random.split(key, 3)

    N, Cin, H, W = 2, 4, 16, 16
    Cout = 8
    x = jax.random.normal(kx, (N, Cin, H, W), dtype=jnp.float32)

    mod = ConvBN2dPallas(Cin, Cout, kernel_size=3, stride=1, padding=1,
                         outRelu=True, leaky=True, key=kw1)

    # mixup path
    lbda = 0.7
    perm = jnp.array([1, 0], dtype=jnp.int32)
    out = jax.block_until_ready(mod(x, lbda=lbda, perm=perm))
    ref = reference(x, mod.w, mod.gamma, mod.beta, lbda, perm,
                    out_relu=True, leaky=True, stride=1, padding=1)
    assert out.shape == (N, Cout, H, W)
    assert jnp.all(jnp.isfinite(out))
    assert jnp.allclose(out, ref, atol=2e-2, rtol=2e-2), (
        float(jnp.max(jnp.abs(out - ref))))

    # no-mixup path (specialized kernel without the permuted read)
    out2 = jax.block_until_ready(mod(x))
    ref2 = reference(x, mod.w, mod.gamma, mod.beta, None, None,
                     out_relu=True, leaky=True, stride=1, padding=1)
    assert jnp.allclose(out2, ref2, atol=2e-2, rtol=2e-2), (
        float(jnp.max(jnp.abs(out2 - ref2))))

    # stride-2 path (wrapper-side strided tap extraction, same kernels)
    mod2 = ConvBN2dPallas(Cin, Cout, kernel_size=3, stride=2, padding=1,
                          outRelu=False, leaky=True, key=kw2)
    out3 = jax.block_until_ready(mod2(x))
    ref3 = reference(x, mod2.w, mod2.gamma, mod2.beta, None, None,
                     out_relu=False, leaky=True, stride=2, padding=1)
    assert out3.shape == ref3.shape
    assert jnp.allclose(out3, ref3, atol=2e-2, rtol=2e-2), (
        float(jnp.max(jnp.abs(out3 - ref3))))

    print("KERNEL_OK")
</pallas_src>

<mosaic_0001>
module attributes {stable_mosaic.version = 11 : i64} {
  func.func @_conv_stats_kernel(%arg0: i32, %arg1: i32, %arg2: i32, %arg3: memref<1x18x18x4xbf16, #tpu.memory_space<vmem>>, %arg4: memref<36x128xbf16, #tpu.memory_space<vmem>>, %arg5: memref<1x256x128xbf16, #tpu.memory_space<vmem>>, %arg6: memref<1x1x1x128xf32, #tpu.memory_space<vmem>>, %arg7: memref<1x1x1x128xf32, #tpu.memory_space<vmem>>) attributes {dimension_semantics = [#tpu.dimension_semantics<parallel>, #tpu.dimension_semantics<parallel>, #tpu.dimension_semantics<parallel>], iteration_bounds = array<i64: 2, 1, 1>, scalar_prefetch = 0 : i64, scratch_operands = 0 : i64, tpu.core_type = #tpu.core_type<tc>, window_params = [{transform_indices = @transform_0, window_bounds = array<i64: 1, 18, 18, 4>}, {transform_indices = @transform_1, window_bounds = array<i64: 36, 128>}, {transform_indices = @transform_2, window_bounds = array<i64: 1, 256, 128>}, {transform_indices = @transform_3, window_bounds = array<i64: 1, 1, 1, 128>}, {transform_indices = @transform_4, window_bounds = array<i64: 1, 1, 1, 128>}]} {
    %c0 = arith.constant 0 : index
    %c0_0 = arith.constant 0 : index
    %c0_1 = arith.constant 0 : index
    %c0_2 = arith.constant 0 : index
    %0 = vector.load %arg3[%c0, %c0_0, %c0_1, %c0_2] : memref<1x18x18x4xbf16, #tpu.memory_space<vmem>>, vector<1x16x16x4xbf16>
    %1 = vector.shape_cast %0 : vector<1x16x16x4xbf16> to vector<16x16x4xbf16>
    %c0_3 = arith.constant 0 : index
    %c0_4 = arith.constant 0 : index
    %c1 = arith.constant 1 : index
    %c0_5 = arith.constant 0 : index
    %2 = vector.load %arg3[%c0_3, %c0_4, %c1, %c0_5] : memref<1x18x18x4xbf16, #tpu.memory_space<vmem>>, vector<1x16x16x4xbf16>
    %3 = vector.shape_cast %2 : vector<1x16x16x4xbf16> to vector<16x16x4xbf16>
    %c0_6 = arith.constant 0 : index
    %c0_7 = arith.constant 0 : index
    %c2 = arith.constant 2 : index
    %c0_8 = arith.constant 0 : index
    %4 = vector.load %arg3[%c0_6, %c0_7, %c2, %c0_8] : memref<1x18x18x4xbf16, #tpu.memory_space<vmem>>, vector<1x16x16x4xbf16>
    %5 = vector.shape_cast %4 : vector<1x16x16x4xbf16> to vector<16x16x4xbf16>
    %c0_9 = arith.constant 0 : index
    %c1_10 = arith.constant 1 : index
    %c0_11 = arith.constant 0 : index
    %c0_12 = arith.constant 0 : index
    %6 = vector.load %arg3[%c0_9, %c1_10, %c0_11, %c0_12] : memref<1x18x18x4xbf16, #tpu.memory_space<vmem>>, vector<1x16x16x4xbf16>
    %7 = vector.shape_cast %6 : vector<1x16x16x4xbf16> to vector<16x16x4xbf16>
    %c0_13 = arith.constant 0 : index
    %c1_14 = arith.constant 1 : index
    %c1_15 = arith.constant 1 : index
    %c0_16 = arith.constant 0 : index
    %8 = vector.load %arg3[%c0_13, %c1_14, %c1_15, %c0_16] : memref<1x18x18x4xbf16, #tpu.memory_space<vmem>>, vector<1x16x16x4xbf16>
    %9 = vector.shape_cast %8 : vector<1x16x16x4xbf16> to vector<16x16x4xbf16>
    %c0_17 = arith.constant 0 : index
    %c1_18 = arith.constant 1 : index
    %c2_19 = arith.constant 2 : index
    %c0_20 = arith.constant 0 : index
    %10 = vector.load %arg3[%c0_17, %c1_18, %c2_19, %c0_20] : memref<1x18x18x4xbf16, #tpu.memory_space<vmem>>, vector<1x16x16x4xbf16>
    %11 = vector.shape_cast %10 : vector<1x16x16x4xbf16> to vector<16x16x4xbf16>
    %c0_21 = arith.constant 0 : index
    %c2_22 = arith.constant 2 : index
    %c0_23 = arith.constant 0 : index
    %c0_24 = arith.constant 0 : index
    %12 = vector.load %arg3[%c0_21, %c2_22, %c0_23, %c0_24] : memref<1x18x18x4xbf16, #tpu.memory_space<vmem>>, vector<1x16x16x4xbf16>
    %13 = vector.shape_cast %12 : vector<1x16x16x4xbf16> to vector<16x16x4xbf16>
    %c0_25 = arith.constant 0 : index
    %c2_26 = arith.constant 2 : index
    %c1_27 = arith.constant 1 : index
    %c0_28 = arith.constant 0 : index
    %14 = vector.load %arg3[%c0_25, %c2_26, %c1_27, %c0_28] : memref<1x18x18x4xbf16, #tpu.memory_space<vmem>>, vector<1x16x16x4xbf16>
    %15 = vector.shape_cast %14 : vector<1x16x16x4xbf16> to vector<16x16x4xbf16>
    %c0_29 = arith.constant 0 : index
    %c2_30 = arith.constant 2 : index
    %c2_31 = arith.constant 2 : index
    %c0_32 = arith.constant 0 : index
    %16 = vector.load %arg3[%c0_29, %c2_30, %c2_31, %c0_32] : memref<1x18x18x4xbf16, #tpu.memory_space<vmem>>, vector<1x16x16x4xbf16>
    %17 = vector.shape_cast %16 : vector<1x16x16x4xbf16> to vector<16x16x4xbf16>
    %18 = tpu.concatenate %1, %3, %5, %7, %9, %11, %13, %15, %17 in 2 : vector<16x16x4xbf16>, vector<16x16x4xbf16>, vector<16x16x4xbf16>, vector<16x16x4xbf16>, vector<16x16x4xbf16>, vector<16x16x4xbf16>, vector<16x16x4xbf16>, vector<16x16x4xbf16>, vector<16x16x4xbf16> -> vector<16x16x36xbf16>
    %19 = vector.shape_cast %18 : vector<16x16x36xbf16> to vector<256x36xbf16>
    %c0_33 = arith.constant 0 : index
    %c0_34 = arith.constant 0 : index
    %20 = vector.load %arg4[%c0_33, %c0_34] : memref<36x128xbf16, #tpu.memory_space<vmem>>, vector<36x128xbf16>
    %cst = arith.constant dense<0.000000e+00> : vector<256x128xf32>
    %21 = tpu.matmul %19, %20, %cst {dimension_numbers = #tpu.dot_dimension_numbers<[1], [0], [0], [1], [0, 0, 1, 1], [], []>} : vector<256x36xbf16>, vector<36x128xbf16>, vector<256x128xf32> -> vector<256x128xf32>
    %22 = vector.shape_cast %21 : vector<256x128xf32> to vector<1x256x128xf32>
    %23 = arith.truncf %22 : vector<1x256x128xf32> to vector<1x256x128xbf16>
    %c0_35 = arith.constant 0 : index
    %c0_36 = arith.constant 0 : index
    %c0_37 = arith.constant 0 : index
    %24 = vector.load %arg5[%c0_35, %c0_36, %c0_37] : memref<1x256x128xbf16, #tpu.memory_space<vmem>>, vector<1x256x128xbf16>
    tpu.vector_store %arg5[%c0_35, %c0_36, %c0_37], %23 {strides = array<i32>} : memref<1x256x128xbf16, #tpu.memory_space<vmem>>, vector<1x256x128xbf16>,
    %cst_38 = arith.constant dense<0.000000e+00> : vector<128xf32>
    %25 = vector.multi_reduction <add>, %21, %cst_38 [0] : vector<256x128xf32> to vector<128xf32>
    %26 = vector.shape_cast %25 : vector<128xf32> to vector<1x1x1x128xf32>
    %c0_39 = arith.constant 0 : index
    %c0_40 = arith.constant 0 : index
    %c0_41 = arith.constant 0 : index
    %c0_42 = arith.constant 0 : index
    %27 = vector.load %arg6[%c0_39, %c0_40, %c0_41, %c0_42] : memref<1x1x1x128xf32, #tpu.memory_space<vmem>>, vector<1x1x1x128xf32>
    tpu.vector_store %arg6[%c0_39, %c0_40, %c0_41, %c0_42], %26 {strides = array<i32>} : memref<1x1x1x128xf32, #tpu.memory_space<vmem>>, vector<1x1x1x128xf32>,
    %28 = arith.mulf %21, %21 : vector<256x128xf32>
    %cst_43 = arith.constant dense<0.000000e+00> : vector<128xf32>
    %29 = vector.multi_reduction <add>, %28, %cst_43 [0] : vector<256x128xf32> to vector<128xf32>
    %30 = vector.shape_cast %29 : vector<128xf32> to vector<1x1x1x128xf32>
    %c0_44 = arith.constant 0 : index
    %c0_45 = arith.constant 0 : index
    %c0_46 = arith.constant 0 : index
    %c0_47 = arith.constant 0 : index
    %31 = vector.load %arg7[%c0_44, %c0_45, %c0_46, %c0_47] : memref<1x1x1x128xf32, #tpu.memory_space<vmem>>, vector<1x1x1x128xf32>
    tpu.vector_store %arg7[%c0_44, %c0_45, %c0_46, %c0_47], %30 {strides = array<i32>} : memref<1x1x1x128xf32, #tpu.memory_space<vmem>>, vector<1x1x1x128xf32>,
    return
  }
  func.func @transform_0(%arg0: i32, %arg1: i32, %arg2: i32) -> (i32, i32, i32, i32) {
    %c0_i32 = arith.constant 0 : i32
    %c0_i32_0 = arith.constant 0 : i32
    %c0_i32_1 = arith.constant 0 : i32
    %c0_i32_2 = arith.constant 0 : i32
    return %arg0, %c0_i32, %c0_i32_0, %c0_i32_1 : i32, i32, i32, i32
  }
  func.func @transform_1(%arg0: i32, %arg1: i32, %arg2: i32) -> (i32, i32) {
    %c0_i32 = arith.constant 0 : i32
    %c0_i32_0 = arith.constant 0 : i32
    return %c0_i32, %arg1 : i32, i32
  }
  func.func @transform_2(%arg0: i32, %arg1: i32, %arg2: i32) -> (i32, i32, i32) {
    %c0_i32 = arith.constant 0 : i32
    return %arg0, %arg2, %arg1 : i32, i32, i32
  }
  func.func @transform_3(%arg0: i32, %arg1: i32, %arg2: i32) -> (i32, i32, i32, i32) {
    %c0_i32 = arith.constant 0 : i32
    %c0_i32_0 = arith.constant 0 : i32
    return %arg0, %arg2, %c0_i32, %arg1 : i32, i32, i32, i32
  }
  func.func @transform_4(%arg0: i32, %arg1: i32, %arg2: i32) -> (i32, i32, i32, i32) {
    %c0_i32 = arith.constant 0 : i32
    %c0_i32_0 = arith.constant 0 : i32
    return %arg0, %arg2, %c0_i32, %arg1 : i32, i32, i32, i32
  }
}

</mosaic_0001>

<bundles_post_ra>
// kernel: tpu_custom_call.1
= control target key start
LH: loop header
LB: loop body
LE: loop exit
PB: predicated region body
PF: predicated region fallthrough
CT: control target
= control target key end

     0   :  { %10 = vsyncpa [#allocation3], 0  ;;  %s5110_s0 = inlined_call_operand.vmem [shape: bf16[2,18,18,4], index: 0, kind: input, shape index: {}]   ;;  %s5111_s1 = inlined_call_operand.vmem [shape: bf16[36,128], index: 1, kind: input, shape index: {}]   ;;  %s5112_s2 = inlined_call_operand.hbm [shape: bf16[2,256,128], index: 2, kind: output, shape index: {0}]   ;;  %s5113_s3 = inlined_call_operand.hbm [shape: f32[2,1,1,128], index: 3, kind: output, shape index: {1}]   ;;  %s5114_s4 = inlined_call_operand.hbm [shape: f32[2,1,1,128], index: 4, kind: output, shape index: {2}]  }
   0x1   :  { %12 = vsyncpa [#allocation3 + $0x1], 0 }
   0x2   :  { %13 = vsyncpa [#allocation5], 0 }
   0x3   :  { %15 = vsyncpa [#allocation5 + $0x1], 0  ;;  %s3846_s15 = smov 0   ;;  %s3848_s16 = smov 0  }
   0x4   :  { %s3850_s17 = smov 0   ;;  %s3852_s18 = smov 0  }
   0x5   :  { %s3854_s19 = smov 0   ;;  %s3856_s20 = smov 0  }
   0x6 LB: > { %s2916_s21 = sadd.s32 4294967295, %s3807_s20   ;;  %s2917_s22 = sadd.s32 4294967294, %s3807_s20   ;;  %s3807_s20 = sphi %s3856_s20, %s21_s20   ;;  %s3803_s19 = sphi %s3854_s19, %s5121_s19   ;;  %s3799_s18 = sphi %s3852_s18, %s5120_s18   ;;  %s3795_s17 = sphi %s3850_s17, %s5119_s17   ;;  %s3791_s16 = sphi %s3848_s16, %s5118_s16   ;;  %s3787_s15 = sphi %s3846_s15, %s5117_s15  }
   0x7   : > { %s40_s23 = sadd.s32 1, %s3803_s19  ;;  %s103_s24 = sadd.s32 1, %s3795_s17 }
   0x8   : > { %p42_p0 = scmp.ge.s32.totalorder %s40_s23, 2  ;;  %p113_p1 = scmp.ne.s32.totalorder %s3795_s17, %s3791_s16 }
   0x9   : > { %p114_p2 = scmp.eq.s32.totalorder %s2916_s21, 1  ;;  %p119_p3 = scmp.ne.s32.totalorder %s3791_s16, %s3787_s15 }
   0xa   : > { %s5123_s23 = smov (%p42_p0, %s40_s23), 0  ;;  %p120_p5 = scmp.eq.s32.totalorder %s2917_s22, 1 }
   0xb   : > { %p3888_p4 = por %p114_p2, %p113_p1  ;;  %s96_s26 = ssub.s32 %s3803_s19, %s5123_s23 }
   0xc   : > { %p2921_p6 = scmp.ge.s32.totalorder %s3807_s20, 1  ;;  %p101_p7 = scmp.eq.s32.totalorder %s96_s26, 0 }
   0xd   : > { %p3897_p8 = por %p120_p5, %p119_p3  ;;  %p213_p9 = scmp.lt.s32.totalorder %s3807_s20, 3 }
   0xe   : > { %s3903_s28 = scalar_select %p101_p7, %s3795_s17, %s103_s24  }
   0xf   : > { %p214_p10 = pnand %p2921_p6, %p213_p9 }
  0x10   : > { %p251_p11 = scmp.lt.s32.totalorder (!%p214_p10), %s3799_s18, 1  ;;  %vm857_vm0 = vcmask (!%p214_p10), 1046528   ;;  %s3809_s8 = smov (!%p214_p10), 12   ;;  %vm584_vm1 = vsmask.f32 (!%p214_p10), 7424  ;;  %v3600_v57 = vld [vmem:[%s5111_s1] sm:$0xff] (!%p214_p10)  }
  0x11   : > { %217 = sbr.rel (%p214_p10) target bundleno = 685 (0x2ad), region = 28  ;;  %s3810_s9 = smov (!%p214_p10), 20   ;;  %3401 = vmatprep.subr.bf16.mxu0 (!%p214_p10), %v3600_v57  ;;  %3439 = vmatprep.subr.bf16.mxu1 (!%p214_p10), %v3600_v57  ;;  %vm2279_vm2 = vcmask (!%p214_p10), 1041408   ;;  %vm1962_vm3 = vcmask (!%p214_p10), 31744   ;;  %vm1995_vm4 = vcmask (!%p214_p10), 64512   ;;  %vm2028_vm5 = vcmask (!%p214_p10), 97280  }
  0x12   : > { %s3811_s10 = smov (!%p214_p10), 8   ;;  %s3812_s13 = smov (!%p214_p10), 4   ;;  %3402 = vmatpush3.bf16.msra.mxu0 (!%p214_p10), %v3600_v57  ;;  %3442 = vmatpush3.bf16.msra.mxu1 (!%p214_p10), %v3600_v57  ;;  %vm2061_vm6 = vcmask (!%p214_p10), 130048   ;;  %vm2094_vm7 = vcmask (!%p214_p10), 162816   ;;  %vm2127_vm8 = vcmask (!%p214_p10), 195584   ;;  %vm2160_vm9 = vcmask (!%p214_p10), 228352  }
  0x13   : > { %s3813_s26 = smov (!%p214_p10), 16   ;;  %s3816_s5 = smov (!%p214_p10), 32   ;;  %vm2193_vm10 = vcmask (!%p214_p10), 261120   ;;  %vm2246_vm11 = vcmask (!%p214_p10), 293888  }
  0x18   : > { %s252_s29 = scalar_select %p251_p11, %s3799_s18, 1 }
  0x1a   : > { %s3447_s30 = smul.u32 216, %s252_s29  ;;  %s3814_s29 = smov 24  }
  0x1c   : > { %s3910_s7 = scalar_lea.vmem %s5110_s0, %s3447_s30  ;;  %s3815_s30 = smov 28  }
  0x1d   : > { %v2926_v0 = vld [vmem:[%s3910_s7 + $0x18] sm:$0xf]  ;;  %v2927_v1 = vld [vmem:[%s3910_s7 + $0x1c] sm:$0xf]  ;;  %v2924_v5 = vld [vmem:[%s3910_s7 + $0xc] sm:$0xf] }
  0x1e   : > { %v2973_v2 = vld [vmem:[%s3910_s7 + $0x18] sm:$0xe]  ;;  %v3915_v3 = vcombine.low %v2926_v0, %v2927_v1  ;;  %v2925_v6 = vld [vmem:[%s3910_s7 + $0x10] sm:$0xf]  ;;  %v2972_v7 = vld [vmem:[%s3910_s7 + $0xc] sm:$0xe] }
  0x1f   : > { %v3133_v4 = vcombine.low %v2973_v2, %v2927_v1  ;;  %v3920_v8 = vcombine.low %v2924_v5, %v2925_v6  ;;  %v3132_v9 = vcombine.low %v2972_v7, %v2925_v6  ;;  %v3923_v10 = vld [vmem:[%s3910_s7 + $0x14] ss:$0 sps:$4 sm:$0x11]   ;;  %v263_v12 = vld [vmem:[%s3910_s7 + $0x4] sm:$0xf] }
  0x20   : > { %1020 = vrot.lane.b32.xlu1 %v3915_v3, %s3809_s8  ;;  %v1113_v11 = vshll.u32 %v3915_v3, 16  ;;  %v1371_v15 = vrot.slane %v3923_v10, 1  ;;  %v310_v16 = vld [vmem:[%s3910_s7] sm:$0xe]  ;;  %v1111_v21 = vshrl.u32 %v3915_v3, 16  ;;  %v1106_v60 = vshll.u32 %v3923_v10, 16 }
  0x21   : > { %1018 = vrot.lane.b32.xlu0 %v3920_v8, %s3809_s8  ;;  %v1101_v13 = vshll.u32 %v3920_v8, 16  ;;  %v1370_v14 = vrot.slane %v3132_v9, 1  ;;  %v1373_v17 = vrot.slane %v3133_v4, 1  ;;  %v3527_v18 = vld [vmem:[%s3910_s7 + $0x8] ss:$0 sps:$4 sm:$0x11]   ;;  %v3084_v19 = vcombine.low %v310_v16, %v263_v12 }
  0x22   : > { %v262_v20 = vld [vmem:[%s3910_s7] sm:$0xf]  ;;  %v264_v24 = vld [vmem:[%s3910_s7 + $0xc] sm:$0xf]  ;;  %v265_v25 = vld [vmem:[%s3910_s7 + $0x10] sm:$0xf] }
  0x23   : > { %v1372_v22 = vsel %vm857_vm0, %v1370_v14, %v1371_v15  ;;  %v3938_v23 = vcombine.low %v262_v20, %v263_v12  ;;  %v858_v26 = vrot.slane %v3084_v19, 1  ;;  %v859_v27 = vrot.slane %v3527_v18, 1  ;;  %v311_v28 = vld [vmem:[%s3910_s7 + $0xc] sm:$0xe]  ;;  %v2990_v43 = vld [vmem:[%s3910_s7 + $0x24] sm:$0xf] }
  0x24   : > { %v3943_v29 = vcombine.low %v264_v24, %v265_v25  ;;  %v593_v30 = vshll.u32 %v3527_v18, 16  ;;  %v3531_v31 = vld [vmem:[%s3910_s7 + $0x14] ss:$0 sps:$4 sm:$0x11]   ;;  %v3085_v32 = vcombine.low %v311_v28, %v265_v25  ;;  %v1115_v35 = vrot.slane %v1113_v11, 1  ;;  %v3605_v12 = vld [vmem:[%s5111_s1 + $0x8] sm:$0xff]  }
  0x25   : > { %1418 = vrot.lane.b32.xlu0 %v1372_v22, %s3810_s9  ;;  %v586_v33 = vshrl.u32 %v3938_v23, 16  ;;  %v588_v34 = vshll.u32 %v3938_v23, 16  ;;  %v860_v36 = vsel %vm857_vm0, %v858_v26, %v859_v27  ;;  %v3533_v38 = vld [vmem:[%s3910_s7 + $0x20] ss:$0 sps:$4 sm:$0x11]   ;;  %v862_v40 = vrot.slane %v3531_v31, 1  ;;  %3403 = vmatprep.subr.bf16.mxu0 %v3605_v12 }
  0x26   : > { %v595_v37 = vrot.slane %v593_v30, 1  ;;  %906 = vrot.lane.b32.xlu1 %v860_v36, %s3811_s10  ;;  %v861_v39 = vrot.slane %v3085_v32, 1  ;;  %v598_v42 = vshrl.u32 %v3943_v29, 16  ;;  %v1374_v44 = vrot.slane %v3533_v38, 1  ;;  %v3956_v48 = vld [vmem:[%s3910_s7 + $0x28] sm:$0xf]  ;;  %3440 = vmatprep.subr.bf16.mxu1 %v3605_v12 }
  0x27   : > { %v590_v41 = vrot.slane %v588_v34, 1  ;;  %v600_v45 = vshll.u32 %v3943_v29, 16  ;;  %v605_v46 = vshll.u32 %v3531_v31, 16  ;;  %v1118_v47 = vshll.u32 %v3533_v38, 16  ;;  %v2988_v53 = vld [vmem:[%s3910_s7 + $0x18] sm:$0xf]  ;;  %3404 = vmatpush3.bf16.msra.mxu0 %v3605_v12  ;;  %3443 = vmatpush3.bf16.msra.mxu1 %v3605_v12 }
  0x28   : > { %v863_v49 = vsel %vm857_vm0, %v861_v39, %v862_v40  ;;  %v1099_v51 = vshrl.u32 %v3920_v8, 16  ;;  %v1103_v52 = vrot.slane %v1101_v13, 1  ;;  %v3962_v56 = vld [vmem:[%s3910_s7 + $0x1c] sm:$0xf]  ;;  %v1116_v59 = vor.u32 %v1115_v35, %v1111_v21  ;;  %v3036_v6 = vld [vmem:[%s3910_s7 + $0x18] sm:$0xe] }
  0x29   : > { %v591_v50 = vor.u32 %v590_v41, %v586_v33  ;;  %v602_v54 = vrot.slane %v600_v45, 1  ;;  %v607_v55 = vrot.slane %v605_v46, 1  ;;  %v3149_v61 = vcombine.low %v2990_v43, %v3956_v48  ;;  %v3975_v2 = vld [vmem:[%s3910_s7 + $0x2c] ss:$0 sps:$4 sm:$0x11]  }
  0x2a   : > { %908 = vrot.lane.b32.xlu1 %v863_v49, %s3811_s10  ;;  %v1375_v62 = vsel %vm857_vm0, %v1373_v17, %v1374_v44  ;;  %v1120_v0 = vrot.slane %v1118_v47, 1  ;;  %v3148_v1 = vcombine.low %v2988_v53, %v3962_v56  ;;  %v1104_v3 = vor.u32 %v1103_v52, %v1099_v51  ;;  %v3979_v7 = vld [vmem:[%s3910_s7 + $0x20] ss:$0 sps:$4 sm:$0x11]   ;;  %v266_v11 = vld [vmem:[%s3910_s7 + $0x18] sm:$0xf] }
  0x2b   : > { %v596_v58 = vsel %vm584_vm1, %v591_v50, %v595_v37  ;;  %v603_v63 = vor.u32 %v602_v54, %v598_v42  ;;  %v1108_v4 = vrot.slane %v1106_v60, 1  ;;  %v1625_v5 = vshll.u32 %v3149_v61, 16  ;;  %v3989_v15 = vld [vmem:[%s3910_s7 + $0x1c] sm:$0xf]  ;;  %v268_v24 = vld [vmem:[%s3910_s7 + $0x24] sm:$0xf] }
  0x2c   : > { %777 = vrot.lane.b32.xlu0 %v596_v58, %s3812_s13  ;;  %v1613_v9 = vshll.u32 %v3148_v1, 16  ;;  %v1623_v10 = vshrl.u32 %v3149_v61, 16  ;;  %v1630_v14 = vshll.u32 %v3975_v2, 16  ;;  %v1121_v16 = vsel %vm584_vm1, %v1116_v59, %v1120_v0  ;;  %v3997_v19 = vld [vmem:[%s3910_s7 + $0x20] ss:$0 sps:$4 sm:$0x11]  }
  0x2d   : > { %v608_v8 = vsel %vm584_vm1, %v603_v63, %v607_v55  ;;  %v1627_v13 = vrot.slane %v1625_v5, 1  ;;  %v1611_v17 = vshrl.u32 %v3148_v1, 16  ;;  %v3994_v18 = vcombine.low %v266_v11, %v3989_v15  ;;  %v269_v25 = vld [vmem:[%s3910_s7 + $0x28] sm:$0xf]  ;;  %v3037_v39 = vld [vmem:[%s3910_s7 + $0x24] sm:$0xe] }
  0x2e   : > { %1420 = vrot.lane.b32.xlu1 %v1375_v62, %s3810_s9  ;;  %v1109_v20 = vsel %vm584_vm1, %v1104_v3, %v1108_v4  ;;  %v1615_v21 = vrot.slane %v1613_v9, 1  ;;  %v1618_v22 = vshll.u32 %v3979_v7, 16  ;;  %v3180_v26 = vcombine.low %v3036_v6, %v3962_v56  ;;  %v3543_v35 = vld [vmem:[%s3910_s7 + $0x2c] ss:$0 sps:$4 sm:$0x11]  }
  0x2f   : > { %v612_v27 = vshll.u32 %v3994_v18, 16  ;;  %v1628_v28 = vor.u32 %v1627_v13, %v1623_v10  ;;  %v1632_v30 = vrot.slane %v1630_v14, 1  ;;  %v617_v31 = vshll.u32 %v3997_v19, 16  ;;  %v313_v44 = vld [vmem:[%s3910_s7 + $0x24] sm:$0xe] }
  0x30   : > { %779 = vrot.lane.b32.xlu0 %v608_v8, %s3812_s13  ;;  %v4007_v32 = vcombine.low %v268_v24, %v269_v25  ;;  %v610_v33 = vshrl.u32 %v3994_v18, 16  ;;  %v1616_v36 = vor.u32 %v1615_v21, %v1611_v17  ;;  %v1620_v37 = vrot.slane %v1618_v22, 1  ;;  %v312_v50 = vld [vmem:[%s3910_s7 + $0x18] sm:$0xe]  ;;  %v2930_v53 = vld [vmem:[%s3910_s7 + $0x30] sm:$0xf] }
  0x31   : > { %v614_v34 = vrot.slane %v612_v27, 1  ;;  %v1633_v40 = vsel %vm584_vm1, %v1628_v28, %v1632_v30  ;;  %v619_v41 = vrot.slane %v617_v31, 1  ;;  %v1882_v42 = vrot.slane %v3180_v26, 1  ;;  %v2931_v54 = vld [vmem:[%s3910_s7 + $0x34] sm:$0xf] }
  0x32   : > { %1292 = vrot.lane.b32.xlu1 %v1121_v16, %s3813_s26  ;;  %v624_v38 = vshll.u32 %v4007_v32, 16  ;;  %v1883_v43 = vrot.slane %v3979_v7, 1  ;;  %v622_v46 = vshrl.u32 %v4007_v32, 16  ;;  %v629_v49 = vshll.u32 %v3543_v35, 16  ;;  %v2928_v55 = vld [vmem:[%s3910_s7 + $0x24] sm:$0xf] }
  0x33   : > { %v615_v45 = vor.u32 %v614_v34, %v610_v33  ;;  %v3181_v51 = vcombine.low %v3037_v39, %v3956_v48  ;;  %v1621_v52 = vsel %vm584_vm1, %v1616_v36, %v1620_v37  ;;  %v2929_v56 = vld [vmem:[%s3910_s7 + $0x28] sm:$0xf]  ;;  %v3087_v58 = vcombine.low %v313_v44, %v269_v25  ;;  %v4035_v3 = vld [vmem:[%s3910_s7 + $0x38] ss:$0 sps:$4 sm:$0x11]  }
  0x34   : > { %1290 = vrot.lane.b32.xlu0 %v1109_v20, %s3813_s26  ;;  %v626_v47 = vrot.slane %v624_v38, 1  ;;  %v1884_v57 = vsel %vm857_vm0, %v1882_v42, %v1883_v43  ;;  %v3103_v48 = vcombine.low %v2930_v53, %v2931_v54  ;;  %v1886_v63 = vrot.slane %v3975_v2, 1  ;;  %v3551_v11 = vld [vmem:[%s3910_s7 + $0x2c] ss:$0 sps:$4 sm:$0x11]  }
  0x35   : > { %v620_v59 = vsel %vm584_vm1, %v615_v45, %v619_v41  ;;  %v1885_v62 = vrot.slane %v3181_v51, 1  ;;  %v3086_v0 = vcombine.low %v312_v50, %v3989_v15  ;;  %v867_v5 = vrot.slane %v3087_v58, 1  ;;  %v2975_v12 = vld [vmem:[%s3910_s7 + $0x30] sm:$0xe]  ;;  %v2974_v13 = vld [vmem:[%s3910_s7 + $0x24] sm:$0xe] }
  0x36   : > { %1532 = vrot.lane.b32.xlu1 %v3149_v61, %s3814_s29  ;;  %v627_v60 = vor.u32 %v626_v47, %v622_v46  ;;  %v631_v61 = vrot.slane %v629_v49, 1  ;;  %v868_v6 = vrot.slane %v3543_v35, 1  ;;  %v1137_v7 = vshll.u32 %v3103_v48, 16  ;;  %v2994_v21 = vld [vmem:[%s3910_s7 + $0x3c] sm:$0xf] }
  0x37   : > { %v1887_v2 = vsel %vm857_vm0, %v1885_v62, %v1886_v63  ;;  %v864_v8 = vrot.slane %v3086_v0, 1  ;;  %v865_v9 = vrot.slane %v3997_v19, 1  ;;  %v1135_v14 = vshrl.u32 %v3103_v48, 16  ;;  %v4050_v22 = vld [vmem:[%s3910_s7 + $0x40] sm:$0xf] }
  0x38   : > { %1530 = vrot.lane.b32.xlu0 %v3148_v1, %s3814_s29  ;;  %v3102_v1 = vcombine.low %v2928_v55, %v2929_v56  ;;  %v632_v4 = vsel %vm584_vm1, %v627_v60, %v631_v61  ;;  %v1142_v15 = vshll.u32 %v4035_v3, 16  ;;  %v869_v16 = vsel %vm857_vm0, %v867_v5, %v868_v6  ;;  %v2992_v26 = vld [vmem:[%s3910_s7 + $0x30] sm:$0xf]  ;;  %v2993_v27 = vld [vmem:[%s3910_s7 + $0x34] sm:$0xf] }
  0x39   : > { %v1139_v17 = vrot.slane %v1137_v7, 1  ;;  %v866_v19 = vsel %vm857_vm0, %v864_v8, %v865_v9  ;;  %v1130_v25 = vshll.u32 %v3551_v11, 16  ;;  %v3135_v28 = vcombine.low %v2975_v12, %v2931_v54  ;;  %v270_v38 = vld [vmem:[%s3910_s7 + $0x30] sm:$0xf]  ;;  %v4060_v39 = vld [vmem:[%s3910_s7 + $0x34] sm:$0xf] }
  0x3a   : > { %1804 = vrot.lane.b32.xlu1 %v1633_v40, %s3815_s30  ;;  %v1125_v10 = vshll.u32 %v3102_v1, 16  ;;  %v1123_v20 = vshrl.u32 %v3102_v1, 16  ;;  %v3134_v30 = vcombine.low %v2974_v13, %v2929_v56  ;;  %v3151_v31 = vcombine.low %v2994_v21, %v4050_v22  ;;  %v4065_v45 = vld [vmem:[%s3910_s7 + $0x44] ss:$0 sps:$4 sm:$0x11]  }
  0x3b   : > { %v1140_v33 = vor.u32 %v1139_v17, %v1135_v14  ;;  %v1144_v34 = vrot.slane %v1142_v15, 1  ;;  %v3150_v35 = vcombine.low %v2992_v26, %v2993_v27  ;;  %v1132_v37 = vrot.slane %v1130_v25, 1  ;;  %v3557_v49 = vld [vmem:[%s3910_s7 + $0x38] ss:$0 sps:$4 sm:$0x11]  }
  0x3c   : > { %1802 = vrot.lane.b32.xlu0 %v1621_v52, %s3815_s30  ;;  %v1127_v24 = vrot.slane %v1125_v10, 1  ;;  %v1379_v40 = vrot.slane %v3135_v28, 1  ;;  %v1380_v41 = vrot.slane %v4035_v3, 1  ;;  %v1376_v42 = vrot.slane %v3134_v30, 1  ;;  %v272_v52 = vld [vmem:[%s3910_s7 + $0x3c] sm:$0xf] }
  0x3d   : > { %v1377_v43 = vrot.slane %v3551_v11, 1  ;;  %v1649_v44 = vshll.u32 %v3151_v31, 16  ;;  %v1145_v46 = vsel %vm584_vm1, %v1140_v33, %v1144_v34  ;;  %v1637_v47 = vshll.u32 %v3150_v35, 16  ;;  %v273_v53 = vld [vmem:[%s3910_s7 + $0x40] sm:$0xf] }
  0x3e   : > { %781 = vrot.lane.b32.xlu1 %v620_v59, %s3812_s13  ;;  %v1128_v36 = vor.u32 %v1127_v24, %v1123_v20  ;;  %v4071_v50 = vcombine.low %v270_v38, %v4060_v39  ;;  %v1647_v54 = vshrl.u32 %v3151_v31, 16  ;;  %v1654_v56 = vshll.u32 %v4065_v45, 16  ;;  %v3038_v59 = vld [vmem:[%s3910_s7 + $0x30] sm:$0xe]  ;;  %v315_v24 = vld [vmem:[%s3910_s7 + $0x3c] sm:$0xe] }
  0x3f   : > { %v1651_v55 = vrot.slane %v1649_v44, 1  ;;  %v1381_v58 = vsel %vm857_vm0, %v1379_v40, %v1380_v41  ;;  %v4085_v61 = vcombine.low %v272_v52, %v273_v53  ;;  %v1635_v62 = vshrl.u32 %v3150_v35, 16  ;;  %v3561_v8 = vld [vmem:[%s3910_s7 + $0x44] ss:$0 sps:$4 sm:$0x11]  }
  0x40   : > { %1930 = vrot.lane.b32.xlu0 %v1884_v57, %s3816_s5  ;;  %v1133_v51 = vsel %vm584_vm1, %v1128_v36, %v1132_v37  ;;  %v4079_v57 = vld [vmem:[%s3910_s7 + $0x38] ss:$0 sps:$4 sm:$0x11]   ;;  %v636_v60 = vshll.u32 %v4071_v50, 16  ;;  %v1639_v63 = vrot.slane %v1637_v47, 1  ;;  %v1642_v0 = vshll.u32 %v3557_v49, 16 }
  0x41   : > { %v3182_v3 = vcombine.low %v3038_v59, %v2993_v27  ;;  %v1656_v5 = vrot.slane %v1654_v56, 1  ;;  %v641_v6 = vshll.u32 %v4079_v57, 16  ;;  %v634_v7 = vshrl.u32 %v4071_v50, 16  ;;  %v2935_v26 = vld [vmem:[%s3910_s7 + $0x4c] sm:$0xf] }
  0x42   : > { %783 = vrot.lane.b32.xlu1 %v632_v4, %s3812_s13  ;;  %v1652_v4 = vor.u32 %v1651_v55, %v1647_v54  ;;  %v648_v9 = vshll.u32 %v4085_v61, 16  ;;  %v1640_v10 = vor.u32 %v1639_v63, %v1635_v62  ;;  %v1644_v11 = vrot.slane %v1642_v0, 1  ;;  %v314_v27 = vld [vmem:[%s3910_s7 + $0x30] sm:$0xe]  ;;  %v2932_v28 = vld [vmem:[%s3910_s7 + $0x3c] sm:$0xf] }
  0x43   : > { %v643_v14 = vrot.slane %v641_v6, 1  ;;  %v1888_v15 = vrot.slane %v3182_v3, 1  ;;  %v646_v20 = vshrl.u32 %v4085_v61, 16  ;;  %v2933_v30 = vld [vmem:[%s3910_s7 + $0x40] sm:$0xf]  ;;  %v3089_v33 = vcombine.low %v315_v24, %v273_v53 }
  0x44   : > { %1932 = vrot.lane.b32.xlu0 %v1887_v2, %s3816_s5  ;;  %v638_v2 = vrot.slane %v636_v60, 1  ;;  %v1657_v13 = vsel %vm584_vm1, %v1652_v4, %v1656_v5  ;;  %v650_v21 = vrot.slane %v648_v9, 1  ;;  %v1645_v25 = vsel %vm584_vm1, %v1640_v10, %v1644_v11  ;;  %v3569_v53 = vld [vmem:[%s3910_s7 + $0x44] ss:$0 sps:$4 sm:$0x11]  }
  0x45   : > { %v1892_v40 = vrot.slane %v4065_v45, 1  ;;  %v3088_v41 = vcombine.low %v314_v27, %v4060_v39  ;;  %v873_v44 = vrot.slane %v3089_v33, 1  ;;  %v871_v52 = vrot.slane %v4079_v57, 1  ;;  %v2998_v54 = vld [vmem:[%s3910_s7 + $0x54] sm:$0xf] }
  0x46   : > { %912 = vrot.lane.b32.xlu1 %v869_v16, %s3811_s10  ;;  %v1889_v16 = vrot.slane %v3557_v49, 1  ;;  %v639_v17 = vor.u32 %v638_v2, %v634_v7  ;;  %v3568_v49 = vld [vmem:[%s3910_s7 + $0x50] ss:$0 sps:$4 sm:$0x11]   ;;  %v4123_v55 = vld [vmem:[%s3910_s7 + $0x58] sm:$0xf] }
  0x47   : > { %v870_v45 = vrot.slane %v3088_v41, 1  ;;  %v2976_v62 = vld [vmem:[%s3910_s7 + $0x3c] sm:$0xe]  ;;  %v3153_v3 = vcombine.low %v2998_v54, %v4123_v55  ;;  %v2996_v4 = vld [vmem:[%s3910_s7 + $0x48] sm:$0xf] }
  0x48   : > { %910 = vrot.lane.b32.xlu0 %v866_v19, %s3811_s10  ;;  %v653_v19 = vshll.u32 %v3561_v8, 16  ;;  %v644_v34 = vsel %vm584_vm1, %v639_v17, %v643_v14  ;;  %v1890_v38 = vsel %vm857_vm0, %v1888_v15, %v1889_v16  ;;  %v4133_v5 = vld [vmem:[%s3910_s7 + $0x4c] sm:$0xf]  ;;  %v3136_v7 = vcombine.low %v2976_v62, %v2933_v30  ;;  %v274_v9 = vld [vmem:[%s3910_s7 + $0x48] sm:$0xf] }
  0x49   : > { %v872_v57 = vsel %vm857_vm0, %v870_v45, %v871_v52  ;;  %v4139_v10 = vld [vmem:[%s3910_s7 + $0x4c] sm:$0xf]  ;;  %v1673_v14 = vshll.u32 %v3153_v3, 16  ;;  %v1386_v16 = vrot.slane %v3568_v49, 1  ;;  %v276_v27 = vld [vmem:[%s3910_s7 + $0x54] sm:$0xf] }
  0x4a   : > { %1024 = vrot.lane.b32.xlu1 %v3103_v48, %s3809_s8  ;;  %v1378_v48 = vsel %vm857_vm0, %v1376_v42, %v1377_v43  ;;  %v655_v36 = vrot.slane %v653_v19, 1  ;;  %v3104_v42 = vcombine.low %v2932_v28, %v2933_v30  ;;  %v4144_v17 = vld [vmem:[%s3910_s7 + $0x5c] ss:$0 sps:$4 sm:$0x11]   ;;  %v1382_v19 = vrot.slane %v3136_v7, 1 }
  0x4b   : > { %v4152_v24 = vld [vmem:[%s3910_s7 + $0x50] ss:$0 sps:$4 sm:$0x11]   ;;  %v4157_v28 = vld [vmem:[%s3910_s7 + $0x58] sm:$0xf]  ;;  %v1671_v30 = vshrl.u32 %v3153_v3, 16 }
  0x4c   : > { %1022 = vrot.lane.b32.xlu0 %v3102_v1, %s3809_s8  ;;  %v3039_v1 = vld [vmem:[%s3910_s7 + $0x3c] sm:$0xe]  ;;  %v1149_v39 = vshll.u32 %v3104_v42, 16  ;;  %v1147_v63 = vshrl.u32 %v3104_v42, 16  ;;  %v1678_v33 = vshll.u32 %v4144_v17, 16 }
  0x4d   : > { %v3183_v12 = vcombine.low %v3039_v1, %v4050_v22  ;;  %v2934_v22 = vld [vmem:[%s3910_s7 + $0x48] sm:$0xf]  ;;  %v1154_v1 = vshll.u32 %v3569_v53, 16  ;;  %v3579_v52 = vld [vmem:[%s3910_s7 + $0x5c] ss:$0 sps:$4 sm:$0x11]  }
  0x4e   : > { %1296 = vrot.lane.b32.xlu1 %v1145_v46, %s3813_s26  ;;  %v3105_v37 = vcombine.low %v2934_v22, %v2935_v26  ;;  %v874_v46 = vrot.slane %v3561_v8, 1  ;;  %v1151_v0 = vrot.slane %v1149_v39, 1  ;;  %v1383_v22 = vrot.slane %v3569_v53, 1  ;;  %v2938_v62 = vld [vmem:[%s3910_s7 + $0x60] sm:$0xf] }
  0x4f   : > { %v316_v7 = vld [vmem:[%s3910_s7 + $0x48] sm:$0xe] }
  0x50   : > { %1294 = vrot.lane.b32.xlu0 %v1133_v51, %s3813_s26  ;;  %v1161_v47 = vshll.u32 %v3105_v37, 16  ;;  %v875_v56 = vsel %vm857_vm0, %v873_v44, %v874_v46  ;;  %v1159_v59 = vshrl.u32 %v3105_v37, 16  ;;  %v1152_v11 = vor.u32 %v1151_v0, %v1147_v63  ;;  %v3040_v44 = vld [vmem:[%s3910_s7 + $0x48] sm:$0xe] }
  0x51   : > { %v3184_v53 = vcombine.low %v3040_v44, %v4133_v5 }
  0x52   : > { %1424 = vrot.lane.b32.xlu1 %v1381_v58, %s3810_s9  ;;  %v2977_v58 = vld [vmem:[%s3910_s7 + $0x48] sm:$0xe]  ;;  %v1163_v60 = vrot.slane %v1161_v47, 1  ;;  %v1680_v47 = vrot.slane %v1678_v33, 1 }
  0x53   : > { %v3137_v6 = vcombine.low %v2977_v58, %v2935_v26  ;;  %v3608_v58 = vld [vmem:[%s5111_s1 + $0x10] ss:$0 sps:$4 sm:$0x33]  }
  0x54   : > { %1422 = vrot.lane.b32.xlu0 %v1378_v48, %s3810_s9  ;;  %v1166_v48 = vshll.u32 %v3568_v49, 16  ;;  %v1164_v2 = vor.u32 %v1163_v60, %v1159_v59  ;;  %3445 = vmatprep.subr.msk.bf16.mxu0 %vm2279_vm2, %v3608_v58 }
  0x55   : > { %v1385_v15 = vrot.slane %v3137_v6, 1  ;;  %v1895_v6 = vrot.slane %v4152_v24, 1  ;;  %3446 = vmatprep.subr.msk.bf16.mxu1 %vm2279_vm2, %v3608_v58 }
  0x56   : > { %1536 = vrot.lane.b32.xlu1 %v3151_v31, %s3814_s29  ;;  %v1891_v31 = vrot.slane %v3183_v12, 1  ;;  %v1168_v8 = vrot.slane %v1166_v48, 1  ;;  %v1156_v12 = vrot.slane %v1154_v1, 1 }
  0x58   : > { %1534 = vrot.lane.b32.xlu0 %v3150_v35, %s3814_s29  ;;  %v651_v35 = vor.u32 %v650_v21, %v646_v20  ;;  %v1893_v51 = vsel %vm857_vm0, %v1891_v31, %v1892_v40  ;;  %v4147_v20 = vcombine.low %v274_v9, %v4139_v10  ;;  %v1169_v21 = vsel %vm584_vm1, %v1164_v2, %v1168_v8  ;;  %v2936_v2 = vld [vmem:[%s3910_s7 + $0x54] sm:$0xf]  ;;  %v4199_v8 = vld [vmem:[%s3910_s7 + $0x58] sm:$0xf] }
  0x59   : > { %v1675_v31 = vrot.slane %v1673_v14, 1  ;;  %v2281_v9 = vsel %vm2279_vm2, %v3608_v58, 0 }
  0x5a   : > { %1808 = vrot.lane.b32.xlu1 %v1657_v13, %s3815_s30  ;;  %v656_v43 = vsel %vm584_vm1, %v651_v35, %v655_v36  ;;  %v3152_v13 = vcombine.low %v2996_v4, %v4133_v5  ;;  %v660_v35 = vshll.u32 %v4147_v20, 16  ;;  %v1387_v36 = vsel %vm857_vm0, %v1385_v15, %v1386_v16  ;;  %v4192_v5 = vld [vmem:[%s3910_s7 + $0x64] sm:$0xf]  ;;  %3406 = vmatpush3.bf16.msra.mxu0 %v2281_v9 }
  0x5b   : > { %v1676_v46 = vor.u32 %v1675_v31, %v1671_v30  ;;  %v658_v49 = vshrl.u32 %v4147_v20, 16  ;;  %v677_v4 = vshll.u32 %v3579_v52, 16  ;;  %3444 = vmatpush3.bf16.msra.mxu1 %v2281_v9  ;;  %v3586_v30 = vld [vmem:[%s3910_s7 + $0x68] ss:$0 sps:$4 sm:$0x11]  }
  0x5c   : > { %1806 = vrot.lane.b32.xlu0 %v1645_v25, %s3815_s30  ;;  %v1157_v25 = vsel %vm584_vm1, %v1152_v11, %v1156_v12  ;;  %v1661_v26 = vshll.u32 %v3152_v13, 16  ;;  %v1659_v40 = vshrl.u32 %v3152_v13, 16  ;;  %v3107_v12 = vcombine.low %v2938_v62, %v4192_v5  ;;  %v3587_v31 = vld [vmem:[%s3910_s7 + $0x5c] ss:$0 sps:$4 sm:$0x11]  }
  0x5d   : > { %v1681_v60 = vsel %vm584_vm1, %v1676_v46, %v1680_v47  ;;  %v679_v15 = vrot.slane %v677_v4, 1  ;;  %v1190_v44 = vshll.u32 %v3586_v30, 16  ;;  %v1178_v46 = vshll.u32 %v3587_v31, 16  ;;  %v4236_v62 = vld [vmem:[%s3910_s7 + $0x64] sm:$0xf] }
  0x5e   : > { %785 = vrot.lane.b32.xlu1 %v644_v34, %s3812_s13  ;;  %v4162_v34 = vld [vmem:[%s3910_s7 + $0x50] ss:$0 sps:$4 sm:$0x11]   ;;  %v1663_v41 = vrot.slane %v1661_v26, 1  ;;  %v880_v26 = vrot.slane %v3579_v52, 1 }
  0x5f   : > { %v665_v45 = vshll.u32 %v4162_v34, 16  ;;  %v877_v33 = vrot.slane %v4162_v34, 1  ;;  %v2978_v34 = vld [vmem:[%s3910_s7 + $0x54] sm:$0xe]  ;;  %v3000_v52 = vld [vmem:[%s3910_s7 + $0x60] sm:$0xf] }
  0x60   : > { %1934 = vrot.lane.b32.xlu0 %v1890_v38, %s3816_s5  ;;  %v1384_v38 = vsel %vm857_vm0, %v1382_v19, %v1383_v22  ;;  %v1664_v54 = vor.u32 %v1663_v41, %v1659_v40  ;;  %v1898_v19 = vrot.slane %v4144_v17, 1  ;;  %v4221_v40 = vld [vmem:[%s3910_s7 + $0x70] sm:$0xf]  ;;  %v2979_v41 = vld [vmem:[%s3910_s7 + $0x60] sm:$0xe]  ;;  %v1192_v58 = vrot.slane %v1190_v44, 1 }
  0x61   : > { %v667_v48 = vrot.slane %v665_v45, 1  ;;  %v280_v9 = vld [vmem:[%s3910_s7 + $0x6c] sm:$0xf] }
  0x62   : > { %787 = vrot.lane.b32.xlu1 %v656_v43, %s3812_s13  ;;  %v3041_v43 = vld [vmem:[%s3910_s7 + $0x54] sm:$0xe]  ;;  %v3043_v44 = vld [vmem:[%s3910_s7 + $0x6c] sm:$0xe] }
  0x63   : > { %v3185_v59 = vcombine.low %v3041_v43, %v4123_v55 }
  0x64   : > { %1936 = vrot.lane.b32.xlu0 %v1893_v51, %s3816_s5  ;;  %v662_v51 = vrot.slane %v660_v35, 1 }
  0x65   : > { %v1897_v16 = vrot.slane %v3185_v59, 1  ;;  %v1180_v59 = vrot.slane %v1178_v46, 1 }
  0x66   : > { %916 = vrot.lane.b32.xlu1 %v875_v56, %s3811_s10  ;;  %v663_v63 = vor.u32 %v662_v51, %v658_v49 }
  0x68   : > { %914 = vrot.lane.b32.xlu0 %v872_v57, %s3811_s10  ;;  %v317_v57 = vld [vmem:[%s3910_s7 + $0x54] sm:$0xe] }
  0x69   : > { %v3091_v11 = vcombine.low %v317_v57, %v4157_v28  ;;  %v278_v57 = vld [vmem:[%s3910_s7 + $0x60] sm:$0xf] }
  0x6a   : > { %1028 = vrot.lane.b32.xlu1 %v3105_v37, %s3809_s8  ;;  %v4168_v37 = vcombine.low %v276_v27, %v4157_v28  ;;  %v1185_v27 = vshll.u32 %v3107_v12, 16 }
  0x6b   : > { %v879_v22 = vrot.slane %v3091_v11, 1  ;;  %v4251_v11 = vld [vmem:[%s3910_s7 + $0x70] sm:$0xf] }
  0x6c   : > { %1026 = vrot.lane.b32.xlu0 %v3104_v42, %s3809_s8  ;;  %v1666_v42 = vshll.u32 %v4152_v24, 16  ;;  %v672_v39 = vshll.u32 %v4168_v37, 16  ;;  %v670_v0 = vshrl.u32 %v4168_v37, 16  ;;  %v3090_v24 = vcombine.low %v316_v7, %v4139_v10 }
  0x6d   : > { %v1899_v10 = vsel %vm857_vm0, %v1897_v16, %v1898_v19  ;;  %v1187_v43 = vrot.slane %v1185_v27, 1 }
  0x6e   : > { %1300 = vrot.lane.b32.xlu1 %v1169_v21, %s3813_s26  ;;  %v1668_v56 = vrot.slane %v1666_v42, 1  ;;  %v674_v1 = vrot.slane %v672_v39, 1  ;;  %v876_v17 = vrot.slane %v3090_v24, 1  ;;  %v1183_v42 = vshrl.u32 %v3107_v12, 16  ;;  %v3001_v39 = vld [vmem:[%s3910_s7 + $0x64] sm:$0xf] }
  0x6f   : > { %v4263_v24 = vcombine.low %v280_v9, %v4251_v11 }
  0x70   : > { %1298 = vrot.lane.b32.xlu0 %v1157_v25, %s3813_s26  ;;  %v1669_v55 = vsel %vm584_vm1, %v1664_v54, %v1668_v56  ;;  %v675_v14 = vor.u32 %v674_v1, %v670_v0  ;;  %v3106_v25 = vcombine.low %v2936_v2, %v4199_v8  ;;  %v878_v47 = vsel %vm857_vm0, %v876_v17, %v877_v33  ;;  %v4240_v1 = vld [vmem:[%s3910_s7 + $0x74] ss:$0 sps:$4 sm:$0x11]  }
  0x71   : > { %v3138_v54 = vcombine.low %v2978_v34, %v4199_v8  ;;  %v1188_v56 = vor.u32 %v1187_v43, %v1183_v42  ;;  %v1389_v2 = vrot.slane %v3587_v31, 1  ;;  %v1904_v9 = vrot.slane %v4240_v1, 1 }
  0x72   : > { %1428 = vrot.lane.b32.xlu1 %v1387_v36, %s3810_s9  ;;  %v680_v28 = vsel %vm584_vm1, %v675_v14, %v679_v15  ;;  %v1173_v35 = vshll.u32 %v3106_v25, 16  ;;  %v881_v36 = vsel %vm857_vm0, %v879_v22, %v880_v26  ;;  %v1171_v49 = vshrl.u32 %v3106_v25, 16  ;;  %v4256_v15 = vld [vmem:[%s3910_s7 + $0x68] ss:$0 sps:$4 sm:$0x11]  }
  0x73   : > { %v1193_v4 = vsel %vm584_vm1, %v1188_v56, %v1192_v58  ;;  %v1702_v14 = vshll.u32 %v4240_v1, 16  ;;  %v689_v33 = vshll.u32 %v4256_v15, 16  ;;  %v3187_v58 = vcombine.low %v3043_v44, %v4221_v40 }
  0x74   : > { %1426 = vrot.lane.b32.xlu0 %v1384_v38, %s3810_s9  ;;  %v3002_v38 = vld [vmem:[%s3910_s7 + $0x6c] sm:$0xf]  ;;  %v1175_v51 = vrot.slane %v1173_v35, 1 }
  0x75   : > { %v3155_v45 = vcombine.low %v3002_v38, %v4221_v40  ;;  %v1704_v17 = vrot.slane %v1702_v14, 1  ;;  %v3597_v38 = vld [vmem:[%s3910_s7 + $0x74] ss:$0 sps:$4 sm:$0x11]  }
  0x76   : > { %1540 = vrot.lane.b32.xlu1 %v3153_v3, %s3814_s29  ;;  %v1894_v3 = vrot.slane %v3184_v53, 1  ;;  %v3139_v53 = vcombine.low %v2979_v41, %v4192_v5  ;;  %v1392_v5 = vrot.slane %v3586_v30, 1  ;;  %v696_v41 = vshll.u32 %v4263_v24, 16 }
  0x77   : > { %v701_v56 = vshll.u32 %v3597_v38, 16  ;;  %v886_v14 = vrot.slane %v3597_v38, 1 }
  0x78   : > { %1538 = vrot.lane.b32.xlu0 %v3152_v13, %s3814_s29  ;;  %v668_v13 = vsel %vm584_vm1, %v663_v63, %v667_v48  ;;  %v1896_v21 = vsel %vm857_vm0, %v1894_v3, %v1895_v6  ;;  %v3154_v48 = vcombine.low %v3000_v52, %v3001_v39  ;;  %v1697_v63 = vshll.u32 %v3155_v45, 16  ;;  %v3593_v3 = vld [vmem:[%s3910_s7 + $0x68] ss:$0 sps:$4 sm:$0x11]  }
  0x79   : > { %v1391_v0 = vrot.slane %v3139_v53, 1  ;;  %v4246_v6 = vcombine.low %v278_v57, %v4236_v62  ;;  %v1690_v27 = vshll.u32 %v3593_v3, 16  ;;  %v694_v53 = vshrl.u32 %v4263_v24, 16  ;;  %v2942_v57 = vld [vmem:[%s3910_s7 + $0x78] sm:$0xf] }
  0x7a   : > { %1812 = vrot.lane.b32.xlu1 %v1681_v60, %s3815_s30  ;;  %v1176_v60 = vor.u32 %v1175_v51, %v1171_v49  ;;  %v1685_v8 = vshll.u32 %v3154_v48, 16  ;;  %v1683_v22 = vshrl.u32 %v3154_v48, 16  ;;  %v1901_v49 = vrot.slane %v3593_v3, 1  ;;  %v319_v51 = vld [vmem:[%s3910_s7 + $0x6c] sm:$0xe] }
  0x7b   : > { %v1393_v16 = vsel %vm857_vm0, %v1391_v0, %v1392_v5  ;;  %v684_v19 = vshll.u32 %v4246_v6, 16  ;;  %v682_v35 = vshrl.u32 %v4246_v6, 16  ;;  %v1692_v43 = vrot.slane %v1690_v27, 1  ;;  %v2940_v0 = vld [vmem:[%s3910_s7 + $0x6c] sm:$0xf] }
  0x7c   : > { %1810 = vrot.lane.b32.xlu0 %v1669_v55, %s3815_s30  ;;  %v1388_v55 = vrot.slane %v3138_v54, 1  ;;  %v1181_v7 = vsel %vm584_vm1, %v1176_v60, %v1180_v59  ;;  %v1687_v26 = vrot.slane %v1685_v8, 1  ;;  %v698_v54 = vrot.slane %v696_v41, 1 }
  0x7d   : > { %v3093_v5 = vcombine.low %v319_v51, %v4251_v11  ;;  %v703_v3 = vrot.slane %v701_v56, 1  ;;  %v1903_v8 = vrot.slane %v3187_v58, 1  ;;  %v4345_v51 = vld [vmem:[%s3910_s7 + $0x7c] sm:$0xf] }
  0x7e   : > { %789 = vrot.lane.b32.xlu1 %v668_v13, %s3812_s13  ;;  %v1699_v13 = vrot.slane %v1697_v63, 1  ;;  %v1688_v42 = vor.u32 %v1687_v26, %v1683_v22  ;;  %v4291_v63 = vld [vmem:[%s3910_s7 + $0x7c] sm:$0xf]  ;;  %v883_v26 = vrot.slane %v4256_v15, 1 }
  0x80   : > { %1938 = vrot.lane.b32.xlu0 %v1896_v21, %s3816_s5  ;;  %v3042_v21 = vld [vmem:[%s3910_s7 + $0x60] sm:$0xe]  ;;  %v1693_v60 = vsel %vm584_vm1, %v1688_v42, %v1692_v43  ;;  %v3006_v42 = vld [vmem:[%s3910_s7 + $0x84] sm:$0xf]  ;;  %v4337_v43 = vld [vmem:[%s3910_s7 + $0x88] sm:$0xf] }
  0x81   : > { %v3186_v31 = vcombine.low %v3042_v21, %v3001_v39 }
  0x82   : > { %791 = vrot.lane.b32.xlu1 %v680_v28, %s3812_s13 }
  0x83   : > { %v1900_v34 = vrot.slane %v3186_v31, 1  ;;  %v4325_v31 = vld [vmem:[%s3910_s7 + $0x74] ss:$0 sps:$4 sm:$0x11]  }
  0x84   : > { %1940 = vrot.lane.b32.xlu0 %v1899_v10, %s3816_s5 }
  0x86   : > { %920 = vrot.lane.b32.xlu1 %v881_v36, %s3811_s10  ;;  %v686_v36 = vrot.slane %v684_v19, 1  ;;  %v885_v19 = vrot.slane %v3093_v5, 1  ;;  %v282_v5 = vld [vmem:[%s3910_s7 + $0x78] sm:$0xf] }
  0x88   : > { %918 = vrot.lane.b32.xlu0 %v878_v47, %s3811_s10  ;;  %v691_v47 = vrot.slane %v689_v33, 1  ;;  %v687_v39 = vor.u32 %v686_v36, %v682_v35  ;;  %v2980_v33 = vld [vmem:[%s3910_s7 + $0x6c] sm:$0xe]  ;;  %v887_v15 = vsel %vm857_vm0, %v885_v19, %v886_v14 }
  0x8a   : > { %1032 = vrot.lane.b32.xlu1 %v3107_v12, %s3809_s8  ;;  %v1695_v12 = vshrl.u32 %v3155_v45, 16  ;;  %v692_v40 = vsel %vm584_vm1, %v687_v39, %v691_v47 }
  0x8c   : > { %1030 = vrot.lane.b32.xlu0 %v3106_v25, %s3809_s8  ;;  %v1390_v25 = vsel %vm857_vm0, %v1388_v55, %v1389_v2  ;;  %v1700_v10 = vor.u32 %v1699_v13, %v1695_v12  ;;  %v699_v55 = vor.u32 %v698_v54, %v694_v53 }
  0x8e   : > { %1304 = vrot.lane.b32.xlu1 %v1193_v4, %s3813_s26  ;;  %v1705_v46 = vsel %vm584_vm1, %v1700_v10, %v1704_v17  ;;  %v4295_v4 = vld [vmem:[%s3910_s7 + $0x70] sm:$0xf]  ;;  %v704_v21 = vsel %vm584_vm1, %v699_v55, %v703_v3  ;;  %v2981_v17 = vld [vmem:[%s3910_s7 + $0x78] sm:$0xe] }
  0x8f   : > { %v4310_v13 = vcombine.low %v2940_v0, %v4295_v4  ;;  %v3141_v54 = vcombine.low %v2981_v17, %v4291_v63  ;;  %v3140_v56 = vcombine.low %v2980_v33, %v4295_v4 }
  0x90   : > { %1302 = vrot.lane.b32.xlu0 %v1181_v7, %s3813_s26  ;;  %v4303_v7 = vcombine.low %v2942_v57, %v4291_v63 }
  0x91   : > { %v1197_v27 = vshll.u32 %v4310_v13, 16  ;;  %v1195_v41 = vshrl.u32 %v4310_v13, 16  ;;  %v1397_v55 = vrot.slane %v3141_v54, 1  ;;  %v3045_v54 = vld [vmem:[%s3910_s7 + $0x84] sm:$0xe] }
  0x92   : > { %1432 = vrot.lane.b32.xlu1 %v1393_v16, %s3810_s9  ;;  %v4267_v28 = vpop.permute.xlu1 %1020  ;;  %v4314_v16 = vld [vmem:[%s3910_s7 + $0x80] ss:$0 sps:$4 sm:$0x11]   ;;  %v1209_v1 = vshll.u32 %v4303_v7, 16  ;;  %v1207_v35 = vshrl.u32 %v4303_v7, 16 }
  0x93   : > { %v4269_v30 = vpop.permute.xlu0 %1018  ;;  %v1214_v36 = vshll.u32 %v4314_v16, 16  ;;  %v1199_v47 = vrot.slane %v1197_v27, 1  ;;  %v1398_v3 = vrot.slane %v4314_v16, 1 }
  0x94   : > { %1430 = vrot.lane.b32.xlu0 %v1390_v25, %s3810_s9  ;;  %v1211_v38 = vrot.slane %v1209_v1, 1 }
  0x95   : > { %v1200_v4 = vor.u32 %v1199_v47, %v1195_v41  ;;  %v1399_v27 = vsel %vm857_vm0, %v1397_v55, %v1398_v3 }
  0x96   : > { %1544 = vrot.lane.b32.xlu1 %v3155_v45, %s3814_s29  ;;  %v318_v45 = vld [vmem:[%s3910_s7 + $0x60] sm:$0xe] }
  0x97   : > { %v4281_v52 = vpop.permute.xlu0 %1418  ;;  %v3092_v12 = vcombine.low %v318_v45, %v4236_v62  ;;  %v1905_v62 = vsel %vm857_vm0, %v1903_v8, %v1904_v9  ;;  %v4353_v45 = vcombine.low %v3006_v42, %v4337_v43  ;;  %v1394_v8 = vrot.slane %v3140_v56, 1 }
  0x98   : > { %1542 = vrot.lane.b32.xlu0 %v3154_v48, %s3814_s29  ;;  %v4286_v59 = vpop.permute.xlu1 %906  ;;  %v1902_v48 = vsel %vm857_vm0, %v1900_v34, %v1901_v49  ;;  %v1202_v34 = vshll.u32 %v4325_v31, 16  ;;  %v3004_v49 = vld [vmem:[%s3910_s7 + $0x78] sm:$0xf]  ;;  %v1395_v9 = vrot.slane %v4325_v31, 1 }
  0x99   : > { %v882_v22 = vrot.slane %v3092_v12, 1  ;;  %v4359_v57 = vcombine.low %v3004_v49, %v4345_v51  ;;  %v1721_v12 = vshll.u32 %v4353_v45, 16 }
  0x9a   : > { %1816 = vrot.lane.b32.xlu1 %v1705_v46, %s3815_s30  ;;  %v1396_v31 = vsel %vm857_vm0, %v1394_v8, %v1395_v9 }
  0x9b   : > { %v884_v46 = vsel %vm857_vm0, %v882_v22, %v883_v26  ;;  %v284_v22 = vld [vmem:[%s3910_s7 + $0x84] sm:$0xf]  ;;  %v1723_v17 = vrot.slane %v1721_v12, 1  ;;  %v3189_v12 = vcombine.low %v3045_v54, %v4337_v43  ;;  %v3625_v54 = vld [vmem:[%s3910_s7 + $0x98] ss:$0 sps:$4 sm:$0x11]  }
  0x9c   : > { %1814 = vrot.lane.b32.xlu0 %v1693_v60, %s3815_s30  ;;  %v4305_v2 = vpop.permute.xlu1 %908  ;;  %v1216_v60 = vrot.slane %v1214_v36, 1  ;;  %v1707_v36 = vshrl.u32 %v4359_v57, 16 }
  0x9e   : > { %v778_v11 = vpop.permute.xlu0 %777  ;;  %793 = vrot.lane.b32.xlu1 %v692_v40, %s3812_s13  ;;  %v4367_v40 = vld [vmem:[%s3910_s7 + $0x7c] sm:$0xf] }
  0x9f   : > { %v1964_v39 = vsel %vm1962_vm3, %v3938_v23, %v778_v11  ;;  %v1212_v23 = vor.u32 %v1211_v38, %v1207_v35  ;;  %v4377_v11 = vld [vmem:[%s3910_s7 + $0x8c] ss:$0 sps:$4 sm:$0x11]   ;;  %v4405_v35 = vld [vmem:[%s3910_s7 + $0x80] ss:$0 sps:$4 sm:$0x11]  }
  0xa0   : > { %1942 = vrot.lane.b32.xlu0 %v1902_v48, %s3816_s5  ;;  %v4319_v25 = vpop.permute.xlu1 %1420  ;;  %v1997_v63 = vsel %vm1995_vm4, %v1964_v39, %v4286_v59  ;;  %v1204_v48 = vrot.slane %v1202_v34, 1  ;;  %v1726_v33 = vshll.u32 %v4377_v11, 16  ;;  %v3044_v39 = vld [vmem:[%s3910_s7 + $0x78] sm:$0xe] }
  0xa1   : > { %v2030_v14 = vsel %vm2028_vm5, %v1997_v63, %v4269_v30  ;;  %v1217_v16 = vsel %vm584_vm1, %v1212_v23, %v1216_v60  ;;  %v4395_v30 = vld [vmem:[%s3910_s7 + $0x88] sm:$0xf]  ;;  %v3188_v55 = vcombine.low %v3044_v39, %v4345_v51 }
  0xa2   : > { %v780_v10 = vpop.permute.xlu0 %779  ;;  %795 = vrot.lane.b32.xlu1 %v704_v21, %s3812_s13  ;;  %v4386_v21 = vld [vmem:[%s3910_s7 + $0x80] ss:$0 sps:$4 sm:$0x11]   ;;  %v4413_v38 = vcombine.low %v284_v22, %v4395_v30 }
  0xa3   : > { %v1966_v58 = vsel %vm1962_vm3, %v3943_v29, %v780_v10  ;;  %v1719_v10 = vshrl.u32 %v4353_v45, 16  ;;  %v1907_v22 = vrot.slane %v4386_v21, 1 }
  0xa4   : > { %1944 = vrot.lane.b32.xlu0 %v1905_v62, %s3816_s5  ;;  %v4339_v44 = vpop.permute.xlu1 %1292  ;;  %v1999_v59 = vsel %vm1995_vm4, %v1966_v58, %v4305_v2  ;;  %v1709_v2 = vshll.u32 %v4359_v57, 16  ;;  %v1205_v62 = vsel %vm584_vm1, %v1200_v4, %v1204_v48  ;;  %v1728_v58 = vrot.slane %v1726_v33, 1  ;;  %v4433_v4 = vld [vmem:[%s3910_s7 + $0x8c] ss:$0 sps:$4 sm:$0x11]  }
  0xa5   : > { %v1724_v56 = vor.u32 %v1723_v17, %v1719_v10  ;;  %v720_v48 = vshll.u32 %v4413_v38, 16  ;;  %v725_v43 = vshll.u32 %v4433_v4, 16  ;;  %v4466_v10 = vld [vmem:[%s3910_s7 + $0x88] sm:$0xf]  ;;  %v1909_v17 = vrot.slane %v3189_v12, 1 }
  0xa6   : > { %v1291_v53 = vpop.permute.xlu0 %1290  ;;  %924 = vrot.lane.b32.xlu1 %v887_v15, %s3811_s10  ;;  %v1711_v47 = vrot.slane %v1709_v2, 1 }
  0xa7   : > { %v2063_v19 = vsel %vm2061_vm6, %v2030_v14, %v1291_v53  ;;  %v722_v2 = vrot.slane %v720_v48, 1  ;;  %v2983_v48 = vld [vmem:[%s3910_s7 + $0x90] sm:$0xe] }
  0xa8   : > { %922 = vrot.lane.b32.xlu0 %v884_v46, %s3811_s10  ;;  %v4363_v0 = vpop.permute.xlu1 %1532 }
  0xaa   : > { %v1531_v29 = vpop.permute.xlu0 %1530  ;;  %1036 = vrot.lane.b32.xlu1 %v4303_v7, %s3809_s8  ;;  %v4389_v7 = vcombine.low %v282_v5, %v4367_v40 }
  0xac   : > { %1034 = vrot.lane.b32.xlu0 %v4310_v13, %s3809_s8  ;;  %v1805_v1 = vpop.permute.xlu1 %1804  ;;  %v2032_v13 = vsel %vm2028_vm5, %v1999_v59, %v4267_v28  ;;  %v2096_v28 = vsel %vm2094_vm7, %v2063_v19, %v4281_v52  ;;  %v708_v15 = vshll.u32 %v4389_v7, 16  ;;  %v1714_v52 = vshll.u32 %v4386_v21, 16  ;;  %v321_v19 = vld [vmem:[%s3910_s7 + $0x84] sm:$0xe] }
  0xad   : > { %v2065_v41 = vsel %vm2061_vm6, %v2032_v13, %v4339_v44  ;;  %v2129_v42 = vsel %vm2127_vm8, %v2096_v28, %v1531_v29  ;;  %v713_v44 = vshll.u32 %v4405_v35, 16  ;;  %v706_v60 = vshrl.u32 %v4389_v7, 16  ;;  %v2946_v13 = vld [vmem:[%s3910_s7 + $0x90] sm:$0xf] }
  0xae   : > { %v1803_v26 = vpop.permute.xlu0 %1802  ;;  %1308 = vrot.lane.b32.xlu1 %v1217_v16, %s3813_s26  ;;  %v2098_v23 = vsel %vm2094_vm7, %v2065_v41, %v4319_v25  ;;  %v710_v63 = vrot.slane %v708_v15, 1  ;;  %v1712_v25 = vor.u32 %v1711_v47, %v1707_v36  ;;  %v1716_v3 = vrot.slane %v1714_v52, 1 }
  0xaf   : > { %v2162_v34 = vsel %vm2160_vm9, %v2129_v42, %v1803_v26  ;;  %v2131_v5 = vsel %vm2127_vm8, %v2098_v23, %v4363_v0  ;;  %v1729_v0 = vsel %vm584_vm1, %v1724_v56, %v1728_v58  ;;  %v715_v14 = vrot.slane %v713_v44, 1  ;;  %v4459_v26 = vld [vmem:[%s3910_s7 + $0x94] sm:$0xf] }
  0xb0   : > { %1306 = vrot.lane.b32.xlu0 %v1205_v62, %s3813_s26  ;;  %v4418_v46 = vpop.permute.xlu1 %781  ;;  %v2164_v59 = vsel %vm2160_vm9, %v2131_v5, %v1805_v1  ;;  %v711_v51 = vor.u32 %v710_v63, %v706_v60  ;;  %v718_v16 = vshrl.u32 %v4413_v38, 16  ;;  %v1906_v62 = vrot.slane %v3188_v55, 1  ;;  %v3626_v60 = vld [vmem:[%s3910_s7 + $0x8c] ss:$0 sps:$4 sm:$0x11]  }
  0xb1   : > { %v3095_v33 = vcombine.low %v321_v19, %v4395_v30  ;;  %v727_v36 = vrot.slane %v725_v43, 1  ;;  %v3111_v15 = vcombine.low %v2946_v13, %v4459_v26  ;;  %v1910_v47 = vrot.slane %v4377_v11, 1  ;;  %v3010_v5 = vld [vmem:[%s3910_s7 + $0x9c] sm:$0xf]  ;;  %v4495_v55 = vld [vmem:[%s3910_s7 + $0xa0] sm:$0xf] }
  0xb2   : > { %v1931_v49 = vpop.permute.xlu0 %1930  ;;  %1436 = vrot.lane.b32.xlu1 %v1399_v27, %s3810_s9  ;;  %v320_v27 = vld [vmem:[%s3910_s7 + $0x78] sm:$0xe]  ;;  %v716_v28 = vsel %vm584_vm1, %v711_v51, %v715_v14  ;;  %v723_v21 = vor.u32 %v722_v2, %v718_v16  ;;  %v1908_v42 = vsel %vm857_vm0, %v1906_v62, %v1907_v22  ;;  %v889_v44 = vrot.slane %v4405_v35, 1  ;;  %v3008_v43 = vld [vmem:[%s3910_s7 + $0x90] sm:$0xf] }
  0xb3   : > { %v2195_v53 = vsel %vm2193_vm10, %v2162_v34, %v1931_v49  ;;  %v3094_v52 = vcombine.low %v320_v27, %v4367_v40  ;;  %v891_v39 = vrot.slane %v3095_v33, 1  ;;  %v1233_v11 = vshll.u32 %v3111_v15, 16  ;;  %v4509_v19 = vld [vmem:[%s3910_s7 + $0x94] sm:$0xf] }
  0xb4   : > { %1434 = vrot.lane.b32.xlu0 %v1396_v31, %s3810_s9  ;;  %3407 = vmatprep.mubr.msk.bf16.mxu0 %vm2246_vm11, %v2195_v53  ;;  %v4438_v29 = vpop.permute.xlu1 %783  ;;  %v2944_v31 = vld [vmem:[%s3910_s7 + $0x84] sm:$0xf]  ;;  %v728_v49 = vsel %vm584_vm1, %v723_v21, %v727_v36  ;;  %v892_v53 = vrot.slane %v4433_v4, 1  ;;  %v1911_v56 = vsel %vm857_vm0, %v1909_v17, %v1910_v47  ;;  %v1226_v14 = vshll.u32 %v3626_v60, 16  ;;  %v286_v17 = vld [vmem:[%s3910_s7 + $0x90] sm:$0xf] }
  0xb5   : > { %v3110_v30 = vcombine.low %v2944_v31, %v4466_v10  ;;  %v888_v58 = vrot.slane %v3094_v52, 1  ;;  %v3143_v16 = vcombine.low %v2983_v48, %v4459_v26  ;;  %v4505_v2 = vcombine.low %v3010_v5, %v4495_v55  ;;  %v4521_v33 = vld [vmem:[%s3910_s7 + $0x94] sm:$0xf]  ;;  %v4526_v52 = vld [vmem:[%s3910_s7 + $0xa4] ss:$0 sps:$4 sm:$0x11]  }
  0xb6   : > { %v1933_v8 = vpop.permute.xlu0 %1932  ;;  %1548 = vrot.lane.b32.xlu1 %v4353_v45, %s3814_s29  ;;  %v1717_v45 = vsel %vm584_vm1, %v1712_v25, %v1716_v3  ;;  %v893_v4 = vsel %vm857_vm0, %v891_v39, %v892_v53  ;;  %v2982_v25 = vld [vmem:[%s3910_s7 + $0x84] sm:$0xe]  ;;  %v1231_v3 = vshrl.u32 %v3111_v15, 16  ;;  %v1228_v26 = vrot.slane %v1226_v14, 1 }
  0xb7   : > { %v2197_v9 = vsel %vm2193_vm10, %v2164_v59, %v1933_v8  ;;  %v1221_v23 = vshll.u32 %v3110_v30, 16  ;;  %v1235_v59 = vrot.slane %v1233_v11, 1  ;;  %v1238_v8 = vshll.u32 %v3625_v54, 16  ;;  %v4534_v53 = vld [vmem:[%s3910_s7 + $0x98] ss:$0 sps:$4 sm:$0x11]  }
  0xb8   : > { %1546 = vrot.lane.b32.xlu0 %v4359_v57, %s3814_s29  ;;  %3408 = vmatmul.mubr.msk.bf16.vlgmr.msra.gmra.mrb[0].mxu0 %vm2246_vm11, %v2197_v9  ;;  %v4453_v1 = vpop.permute.xlu1 %912  ;;  %v890_v9 = vsel %vm857_vm0, %v888_v58, %v889_v44  ;;  %v1219_v12 = vshrl.u32 %v3110_v30, 16  ;;  %v4517_v31 = vcombine.low %v3008_v43, %v4509_v19  ;;  %v1403_v21 = vrot.slane %v3143_v16, 1  ;;  %v288_v44 = vld [vmem:[%s3910_s7 + $0x9c] sm:$0xf]  ;;  %v3046_v43 = vld [vmem:[%s3910_s7 + $0x90] sm:$0xe] }
  0xb9   : > { %v1236_v62 = vor.u32 %v1235_v59, %v1231_v3  ;;  %v1240_v22 = vrot.slane %v1238_v8, 1  ;;  %v1745_v36 = vshll.u32 %v4505_v2, 16  ;;  %v1401_v47 = vrot.slane %v3626_v60, 1  ;;  %v4557_v3 = vld [vmem:[%s3910_s7 + $0x98] ss:$0 sps:$4 sm:$0x11]  }
  0xba   : > { %v4461_v57 = vpop.permute.xlu0 %910  ;;  %1820 = vrot.lane.b32.xlu1 %v1729_v0, %s3815_s30  ;;  %v1223_v0 = vrot.slane %v1221_v23, 1  ;;  %v4537_v11 = vcombine.low %v286_v17, %v4521_v33  ;;  %v1733_v58 = vshll.u32 %v4517_v31, 16  ;;  %v1743_v60 = vshrl.u32 %v4505_v2, 16 }
  0xbb   : > { %v1241_v39 = vsel %vm584_vm1, %v1236_v62, %v1240_v22  ;;  %v1747_v48 = vrot.slane %v1745_v36, 1  ;;  %v1738_v16 = vshll.u32 %v4534_v53, 16  ;;  %v3190_v36 = vcombine.low %v3046_v43, %v4509_v19 }
  0xbc   : > { %1818 = vrot.lane.b32.xlu0 %v1717_v45, %s3815_s30  ;;  %v4473_v41 = vpop.permute.xlu1 %1024  ;;  %v3142_v45 = vcombine.low %v2982_v25, %v4466_v10  ;;  %v1224_v27 = vor.u32 %v1223_v0, %v1219_v12  ;;  %v1404_v10 = vrot.slane %v3625_v54, 1  ;;  %v1731_v25 = vshrl.u32 %v4517_v31, 16 }
  0xbd   : > { %v1735_v14 = vrot.slane %v1733_v58, 1  ;;  %v323_v58 = vld [vmem:[%s3910_s7 + $0x9c] sm:$0xe]  ;;  %v895_v43 = vrot.slane %v4557_v3, 1 }
  0xbe   : > { %v4479_v34 = vpop.permute.xlu0 %1022  ;;  %797 = vrot.lane.b32.xlu1 %v716_v28, %s3812_s13  ;;  %v1405_v23 = vsel %vm857_vm0, %v1403_v21, %v1404_v10 }
  0xc0   : > { %1946 = vrot.lane.b32.xlu0 %v1908_v42, %s3816_s5  ;;  %v4486_v40 = vpop.permute.xlu1 %1296  ;;  %v1400_v42 = vrot.slane %v3142_v45, 1  ;;  %v1748_v45 = vor.u32 %v1747_v48, %v1743_v60  ;;  %v1912_v48 = vrot.slane %v3190_v36, 1 }
  0xc2   : > { %v1295_v63 = vpop.permute.xlu0 %1294  ;;  %799 = vrot.lane.b32.xlu1 %v728_v49, %s3812_s13  ;;  %v1968_v49 = vsel %vm1962_vm3, %v3994_v18, %v4418_v46  ;;  %v4545_v18 = vld [vmem:[%s3910_s7 + $0xa0] sm:$0xf]  ;;  %v1402_v5 = vsel %vm857_vm0, %v1400_v42, %v1401_v47  ;;  %v1740_v42 = vrot.slane %v1738_v16, 1 }
  0xc3   : > { %v4566_v8 = vcombine.low %v288_v44, %v4545_v18 }
  0xc4   : > { %1948 = vrot.lane.b32.xlu0 %v1911_v56, %s3816_s5  ;;  %v4500_v35 = vpop.permute.xlu1 %1424  ;;  %v1229_v56 = vsel %vm584_vm1, %v1224_v27, %v1228_v26  ;;  %v737_v27 = vshll.u32 %v4557_v3, 16 }
  0xc6   : > { %v1423_v51 = vpop.permute.xlu0 %1422  ;;  %928 = vrot.lane.b32.xlu1 %v893_v4, %s3811_s10  ;;  %v1750_v4 = vshll.u32 %v4526_v52, 16 }
  0xc8   : > { %926 = vrot.lane.b32.xlu0 %v890_v9, %s3811_s10  ;;  %v4514_v13 = vpop.permute.xlu1 %1536  ;;  %v1752_v22 = vrot.slane %v1750_v4, 1 }
  0xca   : > { %v1535_v28 = vpop.permute.xlu0 %1534  ;;  %1040 = vrot.lane.b32.xlu1 %v3111_v15, %s3809_s8  ;;  %v2001_v15 = vsel %vm1995_vm4, %v1968_v49, %v4461_v57 }
  0xcb   : > { %v2034_v46 = vsel %vm2028_vm5, %v2001_v15, %v4479_v34  ;;  %v1970_v34 = vsel %vm1962_vm3, %v4007_v32, %v4438_v29 }
  0xcc   : > { %1038 = vrot.lane.b32.xlu0 %v3110_v30, %s3809_s8  ;;  %v1809_v54 = vpop.permute.xlu1 %1808  ;;  %v2067_v57 = vsel %vm2061_vm6, %v2034_v46, %v1295_v63  ;;  %v732_v63 = vshll.u32 %v4537_v11, 16  ;;  %v2003_v9 = vsel %vm1995_vm4, %v1970_v34, %v4453_v1  ;;  %v4621_v34 = vld [vmem:[%s3910_s7 + $0xa0] sm:$0xf] }
  0xcd   : > { %v2100_v59 = vsel %vm2094_vm7, %v2067_v57, %v1423_v51  ;;  %v2036_v32 = vsel %vm2028_vm5, %v2003_v9, %v4473_v41  ;;  %v730_v41 = vshrl.u32 %v4537_v11, 16  ;;  %v1913_v57 = vrot.slane %v4534_v53, 1 }
  0xce   : > { %v1807_v30 = vpop.permute.xlu0 %1806  ;;  %1312 = vrot.lane.b32.xlu1 %v1241_v39, %s3813_s26  ;;  %v2133_v12 = vsel %vm2127_vm8, %v2100_v59, %v1535_v28  ;;  %v2069_v62 = vsel %vm2061_vm6, %v2036_v32, %v4486_v40  ;;  %v734_v17 = vrot.slane %v732_v63, 1  ;;  %v4589_v40 = vld [vmem:[%s3910_s7 + $0xa4] ss:$0 sps:$4 sm:$0x11]   ;;  %v744_v28 = vshll.u32 %v4566_v8, 16 }
  0xcf   : > { %v2166_v29 = vsel %vm2160_vm9, %v2133_v12, %v1807_v30  ;;  %v2102_v26 = vsel %vm2094_vm7, %v2069_v62, %v4500_v35  ;;  %v1736_v35 = vor.u32 %v1735_v14, %v1731_v25  ;;  %v3047_v39 = vld [vmem:[%s3910_s7 + $0x9c] sm:$0xe]  ;;  %v749_v46 = vshll.u32 %v4589_v40, 16 }
  0xd0   : > { %1310 = vrot.lane.b32.xlu0 %v1229_v56, %s3813_s26  ;;  %v4571_v0 = vpop.permute.xlu1 %785  ;;  %v2135_v21 = vsel %vm2127_vm8, %v2102_v26, %v4514_v13  ;;  %v1753_v56 = vsel %vm584_vm1, %v1748_v45, %v1752_v22  ;;  %v739_v13 = vrot.slane %v737_v27, 1  ;;  %v735_v19 = vor.u32 %v734_v17, %v730_v41  ;;  %v2948_v25 = vld [vmem:[%s3910_s7 + $0x9c] sm:$0xf]  ;;  %v3641_v22 = vld [vmem:[%s3910_s7 + $0xb0] ss:$0 sps:$4 sm:$0x11]  }
  0xd1   : > { %v2168_v47 = vsel %vm2160_vm9, %v2135_v21, %v1809_v54  ;;  %v742_v54 = vshrl.u32 %v4566_v8, 16  ;;  %v746_v44 = vrot.slane %v744_v28, 1  ;;  %v3191_v30 = vcombine.low %v3047_v39, %v4495_v55  ;;  %v3642_v41 = vld [vmem:[%s3910_s7 + $0xa4] ss:$0 sps:$4 sm:$0x11]  }
  0xd2   : > { %v1935_v51 = vpop.permute.xlu0 %1934  ;;  %1440 = vrot.lane.b32.xlu1 %v1405_v23, %s3810_s9  ;;  %v1741_v60 = vsel %vm584_vm1, %v1736_v35, %v1740_v42  ;;  %v3097_v59 = vcombine.low %v323_v58, %v4545_v18  ;;  %v740_v63 = vsel %vm584_vm1, %v735_v19, %v739_v13  ;;  %v751_v53 = vrot.slane %v749_v46, 1  ;;  %v2984_v21 = vld [vmem:[%s3910_s7 + $0x9c] sm:$0xe]  ;;  %v4652_v39 = vld [vmem:[%s3910_s7 + $0xb8] sm:$0xf] }
  0xd3   : > { %v2199_v1 = vsel %vm2193_vm10, %v2166_v29, %v1935_v51  ;;  %v747_v9 = vor.u32 %v746_v44, %v742_v54  ;;  %v1914_v16 = vsel %vm857_vm0, %v1912_v48, %v1913_v57  ;;  %v1915_v32 = vrot.slane %v3191_v30, 1  ;;  %v3012_v46 = vld [vmem:[%s3910_s7 + $0xa8] sm:$0xf] }
  0xd4   : > { %1438 = vrot.lane.b32.xlu0 %v1402_v5, %s3810_s9  ;;  %3411 = vmatprep.mubr.msk.bf16.mxu0 %vm2246_vm11, %v2199_v1  ;;  %v4594_v10 = vpop.permute.xlu1 %787  ;;  %v2951_v5 = vld [vmem:[%s3910_s7 + $0xac] sm:$0xf]  ;;  %v1916_v29 = vrot.slane %v4526_v52, 1  ;;  %v3112_v18 = vcombine.low %v2948_v25, %v4621_v34  ;;  %v898_v51 = vrot.slane %v4589_v40, 1  ;;  %v897_v62 = vrot.slane %v3097_v59, 1 }
  0xd5   : > { %v752_v45 = vsel %vm584_vm1, %v747_v9, %v751_v53  ;;  %v2985_v40 = vld [vmem:[%s3910_s7 + $0xa8] sm:$0xe]  ;;  %v1262_v42 = vshll.u32 %v3641_v22, 16  ;;  %v1250_v19 = vshll.u32 %v3642_v41, 16  ;;  %v3144_v44 = vcombine.low %v2984_v21, %v4621_v34 }
  0xd6   : > { %v1937_v49 = vpop.permute.xlu0 %1936  ;;  %1552 = vrot.lane.b32.xlu1 %v4505_v2, %s3814_s29  ;;  %v322_v2 = vld [vmem:[%s3910_s7 + $0x90] sm:$0xe]  ;;  %v1917_v26 = vsel %vm857_vm0, %v1915_v32, %v1916_v29  ;;  %v1245_v17 = vshll.u32 %v3112_v18, 16  ;;  %v899_v36 = vsel %vm857_vm0, %v897_v62, %v898_v51  ;;  %v1243_v13 = vshrl.u32 %v3112_v18, 16  ;;  %v290_v59 = vld [vmem:[%s3910_s7 + $0xa8] sm:$0xf] }
  0xd7   : > { %v2201_v15 = vsel %vm2193_vm10, %v2168_v47, %v1937_v49  ;;  %v3096_v55 = vcombine.low %v322_v2, %v4521_v33  ;;  %v3145_v47 = vcombine.low %v2985_v40, %v2951_v5  ;;  %v3014_v49 = vld [vmem:[%s3910_s7 + $0xb4] sm:$0xf]  ;;  %v4660_v2 = vld [vmem:[%s3910_s7 + $0xac] sm:$0xf]  ;;  %v1264_v48 = vrot.slane %v1262_v42, 1 }
  0xd8   : > { %1550 = vrot.lane.b32.xlu0 %v4517_v31, %s3814_s29  ;;  %3412 = vmatmul.mubr.msk.bf16.gmra.mrb[4].mxu0 %vm2246_vm11, %v2201_v15  ;;  %v4611_v23 = vpop.permute.xlu1 %916  ;;  %v2950_v31 = vld [vmem:[%s3910_s7 + $0xa8] sm:$0xf]  ;;  %v1247_v58 = vrot.slane %v1245_v17, 1  ;;  %v4664_v30 = vcombine.low %v3014_v49, %v4652_v39  ;;  %v4670_v34 = vcombine.low %v3012_v46, %v4660_v2  ;;  %v1410_v9 = vrot.slane %v3641_v22, 1 }
  0xd9   : > { %v3113_v12 = vcombine.low %v2950_v31, %v2951_v5  ;;  %v894_v1 = vrot.slane %v3096_v55, 1  ;;  %v1252_v5 = vrot.slane %v1250_v19, 1  ;;  %v1409_v25 = vrot.slane %v3145_v47, 1  ;;  %v4674_v55 = vld [vmem:[%s3910_s7 + $0xac] sm:$0xf] }
  0xda   : > { %v4617_v4 = vpop.permute.xlu0 %914  ;;  %1824 = vrot.lane.b32.xlu1 %v1753_v56, %s3815_s30  ;;  %v1248_v31 = vor.u32 %v1247_v58, %v1243_v13  ;;  %v1406_v53 = vrot.slane %v3144_v44, 1  ;;  %v4677_v32 = vld [vmem:[%s3910_s7 + $0xbc] ss:$0 sps:$4 sm:$0x11]   ;;  %v1769_v29 = vshll.u32 %v4664_v30, 16  ;;  %v1972_v51 = vsel %vm1962_vm3, %v4071_v50, %v4571_v0 }
  0xdb   : > { %v1257_v52 = vshll.u32 %v3113_v12, 16  ;;  %v1255_v3 = vshrl.u32 %v3113_v12, 16  ;;  %v896_v56 = vsel %vm857_vm0, %v894_v1, %v895_v43  ;;  %v4690_v62 = vcombine.low %v290_v59, %v4674_v55  ;;  %v4698_v50 = vld [vmem:[%s3910_s7 + $0xb8] sm:$0xf]  ;;  %v3048_v46 = vld [vmem:[%s3910_s7 + $0xa8] sm:$0xe] }
  0xdc   : > { %1822 = vrot.lane.b32.xlu0 %v1741_v60, %s3815_s30  ;;  %v4628_v14 = vpop.permute.xlu1 %1028  ;;  %v2005_v1 = vsel %vm1995_vm4, %v1972_v51, %v4617_v4  ;;  %v1253_v22 = vsel %vm584_vm1, %v1248_v31, %v1252_v5  ;;  %v1774_v40 = vshll.u32 %v4677_v32, 16  ;;  %v1771_v21 = vrot.slane %v1769_v29, 1  ;;  %v4742_v59 = vld [vmem:[%s3910_s7 + $0xbc] ss:$0 sps:$4 sm:$0x11]  }
  0xdd   : > { %v1259_v35 = vrot.slane %v1257_v52, 1  ;;  %v1757_v52 = vshll.u32 %v4670_v34, 16 }
  0xde   : > { %v4633_v33 = vpop.permute.xlu0 %1026  ;;  %801 = vrot.lane.b32.xlu1 %v740_v63, %s3812_s13  ;;  %v1776_v44 = vrot.slane %v1774_v40, 1  ;;  %v2954_v40 = vld [vmem:[%s3910_s7 + $0xc0] sm:$0xf] }
  0xdf   : > { %v1260_v60 = vor.u32 %v1259_v35, %v1255_v3  ;;  %v2038_v0 = vsel %vm2028_vm5, %v2005_v1, %v4633_v33  ;;  %v1767_v3 = vshrl.u32 %v4664_v30, 16  ;;  %v4710_v35 = vld [vmem:[%s3910_s7 + $0xb0] ss:$0 sps:$4 sm:$0x11]   ;;  %v1974_v33 = vsel %vm1962_vm3, %v4085_v61, %v4594_v10 }
  0xe0   : > { %1950 = vrot.lane.b32.xlu0 %v1914_v16, %s3816_s5  ;;  %v4641_v27 = vpop.permute.xlu1 %1300  ;;  %v1407_v16 = vrot.slane %v3642_v41, 1  ;;  %v1411_v41 = vsel %vm857_vm0, %v1409_v25, %v1410_v9  ;;  %v2007_v49 = vsel %vm1995_vm4, %v1974_v33, %v4611_v23  ;;  %v1759_v58 = vrot.slane %v1757_v52, 1  ;;  %v4776_v33 = vld [vmem:[%s3910_s7 + $0xb8] sm:$0xf] }
  0xe1   : > { %v1265_v43 = vsel %vm584_vm1, %v1260_v60, %v1264_v48  ;;  %v2040_v61 = vsel %vm2028_vm5, %v2007_v49, %v4628_v14  ;;  %v1772_v48 = vor.u32 %v1771_v21, %v1767_v3  ;;  %v761_v31 = vshll.u32 %v4710_v35, 16  ;;  %v324_v21 = vld [vmem:[%s3910_s7 + $0xa8] sm:$0xe] }
  0xe2   : > { %v1299_v28 = vpop.permute.xlu0 %1298  ;;  %803 = vrot.lane.b32.xlu1 %v752_v45, %s3812_s13  ;;  %v4687_v45 = vld [vmem:[%s3910_s7 + $0xb0] ss:$0 sps:$4 sm:$0x11]   ;;  %v1408_v17 = vsel %vm857_vm0, %v1406_v53, %v1407_v16  ;;  %v2073_v60 = vsel %vm2061_vm6, %v2040_v61, %v4641_v27  ;;  %v754_v14 = vshrl.u32 %v4690_v62, 16 }
  0xe3   : > { %v2071_v4 = vsel %vm2061_vm6, %v2038_v0, %v1299_v28  ;;  %v756_v28 = vshll.u32 %v4690_v62, 16  ;;  %v1762_v19 = vshll.u32 %v4687_v45, 16  ;;  %v325_v0 = vld [vmem:[%s3910_s7 + $0xb4] sm:$0xe] }
  0xe4   : > { %1952 = vrot.lane.b32.xlu0 %v1917_v26, %s3816_s5  ;;  %v4654_v15 = vpop.permute.xlu1 %1428  ;;  %v292_v26 = vld [vmem:[%s3910_s7 + $0xb4] sm:$0xf] }
  0xe5   : > { %v4719_v47 = vcombine.low %v292_v26, %v4698_v50  ;;  %v2106_v5 = vsel %vm2094_vm7, %v2073_v60, %v4654_v15  ;;  %v758_v25 = vrot.slane %v756_v28, 1  ;;  %v1764_v16 = vrot.slane %v1762_v19, 1  ;;  %v3659_v60 = vld [vmem:[%s3910_s7 + $0xc8] ss:$0 sps:$4 sm:$0x11]  }
  0xe6   : > { %v1427_v54 = vpop.permute.xlu0 %1426  ;;  %932 = vrot.lane.b32.xlu1 %v899_v36, %s3811_s10  ;;  %v1755_v36 = vshrl.u32 %v4670_v34, 16  ;;  %v3192_v15 = vcombine.low %v3048_v46, %v4660_v2  ;;  %v773_v26 = vshll.u32 %v4742_v59, 16  ;;  %v3099_v28 = vcombine.low %v325_v0, %v4698_v50 }
  0xe7   : > { %v2104_v42 = vsel %vm2094_vm7, %v2071_v4, %v1427_v54  ;;  %v768_v27 = vshll.u32 %v4719_v47, 16  ;;  %v759_v2 = vor.u32 %v758_v25, %v754_v14  ;;  %v4769_v4 = vld [vmem:[%s3910_s7 + $0xc4] sm:$0xf]  ;;  %v904_v46 = vrot.slane %v4742_v59, 1  ;;  %v2986_v59 = vld [vmem:[%s3910_s7 + $0xb4] sm:$0xe] }
  0xe8   : > { %930 = vrot.lane.b32.xlu0 %v896_v56, %s3811_s10  ;;  %v4667_v57 = vpop.permute.xlu1 %1540  ;;  %v1760_v53 = vor.u32 %v1759_v58, %v1755_v36  ;;  %v2952_v36 = vld [vmem:[%s3910_s7 + $0xb4] sm:$0xf]  ;;  %v775_v49 = vrot.slane %v773_v26, 1  ;;  %v3660_v14 = vld [vmem:[%s3910_s7 + $0xbc] ss:$0 sps:$4 sm:$0x11]  }
  0xe9   : > { %v770_v52 = vrot.slane %v768_v27, 1  ;;  %v4813_v26 = vld [vmem:[%s3910_s7 + $0xc4] sm:$0xf] }
  0xea   : > { %v1539_v63 = vpop.permute.xlu0 %1538  ;;  %1044 = vrot.lane.b32.xlu1 %v3113_v12, %s3809_s8 }
  0xeb   : > { %v2137_v56 = vsel %vm2127_vm8, %v2104_v42, %v1539_v63  ;;  %v2139_v63 = vsel %vm2127_vm8, %v2106_v5, %v4667_v57  ;;  %v1777_v57 = vsel %vm584_vm1, %v1772_v48, %v1776_v44  ;;  %v1922_v42 = vrot.slane %v4677_v32, 1 }
  0xec   : > { %1042 = vrot.lane.b32.xlu0 %v3112_v18, %s3809_s8  ;;  %v1813_v12 = vpop.permute.xlu1 %1812  ;;  %v3114_v32 = vcombine.low %v2952_v36, %v4776_v33  ;;  %v903_v44 = vrot.slane %v3099_v28, 1  ;;  %v901_v5 = vrot.slane %v4710_v35, 1 }
  0xed   : > { %v2172_v29 = vsel %vm2160_vm9, %v2139_v63, %v1813_v12  ;;  %v766_v12 = vshrl.u32 %v4719_v47, 16  ;;  %v2987_v63 = vld [vmem:[%s3910_s7 + $0xc0] sm:$0xe] }
  0xee   : > { %v1811_v18 = vpop.permute.xlu0 %1810  ;;  %1316 = vrot.lane.b32.xlu1 %v1265_v43, %s3813_s26  ;;  %v3049_v43 = vld [vmem:[%s3910_s7 + $0xb4] sm:$0xe]  ;;  %v1269_v25 = vshll.u32 %v3114_v32, 16  ;;  %v3147_v0 = vcombine.low %v2987_v63, %v4769_v4 }
  0xef   : > { %v2170_v10 = vsel %vm2160_vm9, %v2137_v56, %v1811_v18  ;;  %v1765_v18 = vsel %vm584_vm1, %v1760_v53, %v1764_v16  ;;  %v3115_v56 = vcombine.low %v2954_v40, %v4769_v4  ;;  %v905_v53 = vsel %vm857_vm0, %v903_v44, %v904_v46 }
  0xf0   : > { %1314 = vrot.lane.b32.xlu0 %v1253_v22, %s3813_s26  ;;  %v4724_v13 = vpop.permute.xlu1 %789  ;;  %v763_v22 = vrot.slane %v761_v31, 1  ;;  %v1415_v4 = vrot.slane %v3147_v0, 1 }
  0xf1   : > { %v1279_v16 = vshrl.u32 %v3115_v56, 16 }
  0xf2   : > { %v1939_v54 = vpop.permute.xlu0 %1938  ;;  %1444 = vrot.lane.b32.xlu1 %v1411_v41, %s3810_s9  ;;  %v1918_v41 = vrot.slane %v3192_v15, 1 }
  0xf3   : > { %v2203_v23 = vsel %vm2193_vm10, %v2170_v10, %v1939_v54  ;;  %v3098_v10 = vcombine.low %v324_v21, %v4674_v55 }
  0xf4   : > { %1442 = vrot.lane.b32.xlu0 %v1408_v17, %s3810_s9  ;;  %3415 = vmatprep.mubr.msk.bf16.mxu0 %vm2246_vm11, %v2203_v23  ;;  %v4747_v9 = vpop.permute.xlu1 %791  ;;  %v1919_v17 = vrot.slane %v4687_v45, 1  ;;  %v771_v45 = vor.u32 %v770_v52, %v766_v12  ;;  %v1281_v23 = vshll.u32 %v3115_v56, 16  ;;  %v3016_v52 = vld [vmem:[%s3910_s7 + $0xc0] sm:$0xf] }
  0xf5   : > { %v900_v31 = vrot.slane %v3098_v10, 1 }
  0xf6   : > { %v1941_v51 = vpop.permute.xlu0 %1940  ;;  %1556 = vrot.lane.b32.xlu1 %v4664_v30, %s3814_s29  ;;  %v1920_v19 = vsel %vm857_vm0, %v1918_v41, %v1919_v17  ;;  %v776_v54 = vsel %vm584_vm1, %v771_v45, %v775_v49  ;;  %v1283_v15 = vrot.slane %v1281_v23, 1  ;;  %v1416_v45 = vrot.slane %v3659_v60, 1 }
  0xf7   : > { %v2205_v1 = vsel %vm2193_vm10, %v2172_v29, %v1941_v51  ;;  %v1286_v29 = vshll.u32 %v3659_v60, 16  ;;  %v3018_v51 = vld [vmem:[%s3910_s7 + $0xcc] sm:$0xf]  ;;  %v902_v35 = vsel %vm857_vm0, %v900_v31, %v901_v5  ;;  %v1413_v49 = vrot.slane %v3660_v14, 1 }
  0xf8   : > { %1554 = vrot.lane.b32.xlu0 %v4670_v34, %s3814_s29  ;;  %3416 = vmatmul.mubr.msk.bf16.gmra.mrb[8].mxu0 %vm2246_vm11, %v2205_v1  ;;  %v4762_v30 = vpop.permute.xlu1 %920  ;;  %v3193_v34 = vcombine.low %v3049_v43, %v4652_v39  ;;  %v764_v39 = vsel %vm584_vm1, %v759_v2, %v763_v22  ;;  %v1267_v1 = vshrl.u32 %v3114_v32, 16  ;;  %v1274_v22 = vshll.u32 %v3660_v14, 16  ;;  %v4809_v2 = vld [vmem:[%s3910_s7 + $0xd0] sm:$0xf] }
  0xf9   : > { %v1284_v41 = vor.u32 %v1283_v15, %v1279_v16  ;;  %v1288_v17 = vrot.slane %v1286_v29, 1  ;;  %v1978_v5 = vsel %vm1962_vm3, %v4168_v37, %v4747_v9  ;;  %v3051_v15 = vld [vmem:[%s3910_s7 + $0xcc] sm:$0xe] }
  0xfa   : > { %v4771_v3 = vpop.permute.xlu0 %918  ;;  %1828 = vrot.lane.b32.xlu1 %v1777_v57, %s3815_s30  ;;  %v1921_v61 = vrot.slane %v3193_v34, 1  ;;  %v1271_v57 = vrot.slane %v1269_v25, 1  ;;  %v3163_v34 = vcombine.low %v3018_v51, %v4809_v2  ;;  %v1276_v36 = vrot.slane %v1274_v22, 1  ;;  %v3050_v51 = vld [vmem:[%s3910_s7 + $0xc0] sm:$0xe] }
  0xfb   : > { %v3195_v22 = vcombine.low %v3051_v15, %v4809_v2 }
  0xfc   : > { %1826 = vrot.lane.b32.xlu0 %v1765_v18, %s3815_s30  ;;  %v4784_v58 = vpop.permute.xlu1 %1032  ;;  %v1923_v55 = vsel %vm857_vm0, %v1921_v61, %v1922_v42  ;;  %v3146_v18 = vcombine.low %v2986_v59, %v4776_v33  ;;  %v1272_v21 = vor.u32 %v1271_v57, %v1267_v1  ;;  %v3162_v42 = vcombine.low %v3016_v52, %v4813_v26 }
  0xfd   : > { %v1289_v61 = vsel %vm584_vm1, %v1284_v41, %v1288_v17  ;;  %v1793_v10 = vshll.u32 %v3163_v34, 16  ;;  %v1791_v31 = vshrl.u32 %v3163_v34, 16 }
  0xfe   : > { %v1031_v50 = vpop.permute.xlu0 %1030  ;;  %805 = vrot.lane.b32.xlu1 %v764_v39, %s3812_s13  ;;  %v4822_v39 = vld [vmem:[%s3910_s7 + $0xd4] ss:$0 sps:$4 sm:$0x11]   ;;  %v1412_v33 = vrot.slane %v3146_v18, 1  ;;  %v1277_v46 = vsel %vm584_vm1, %v1272_v21, %v1276_v36  ;;  %v1781_v23 = vshll.u32 %v3162_v42, 16  ;;  %v1779_v25 = vshrl.u32 %v3162_v42, 16 }
  0xff   : > { %v1795_v14 = vrot.slane %v1793_v10, 1  ;;  %v3194_v18 = vcombine.low %v3050_v51, %v4813_v26  ;;  %v1927_v21 = vrot.slane %v3195_v22, 1 }
 0x100   : > { %1954 = vrot.lane.b32.xlu0 %v1920_v19, %s3816_s5  ;;  %v4794_v48 = vpop.permute.xlu1 %1304  ;;  %v1976_v19 = vsel %vm1962_vm3, %v4147_v20, %v4724_v13  ;;  %v1417_v13 = vsel %vm857_vm0, %v1415_v4, %v1416_v45 }
 0x101   : > { %v1796_v57 = vor.u32 %v1795_v14, %v1791_v31  ;;  %v1924_v26 = vrot.slane %v3194_v18, 1 }
 0x102   : > { %v1303_v27 = vpop.permute.xlu0 %1302  ;;  %807 = vrot.lane.b32.xlu1 %v776_v54, %s3812_s13  ;;  %v2009_v54 = vsel %vm1995_vm4, %v1976_v19, %v4771_v3  ;;  %v1798_v3 = vshll.u32 %v4822_v39, 16 }
 0x103   : > { %v2042_v60 = vsel %vm2028_vm5, %v2009_v54, %v1031_v50 }
 0x104   : > { %1956 = vrot.lane.b32.xlu0 %v1923_v55, %s3816_s5  ;;  %v4805_v43 = vpop.permute.xlu1 %1432  ;;  %v2075_v20 = vsel %vm2061_vm6, %v2042_v60, %v1303_v27  ;;  %v2011_v27 = vsel %vm1995_vm4, %v1978_v5, %v4762_v30 }
 0x105   : > { %v2044_v29 = vsel %vm2028_vm5, %v2011_v27, %v4784_v58  ;;  %v1800_v58 = vrot.slane %v1798_v3, 1 }
 0x106   : > { %v1431_v12 = vpop.permute.xlu0 %1430  ;;  %936 = vrot.lane.b32.xlu1 %v905_v53, %s3811_s10  ;;  %v1783_v53 = vrot.slane %v1781_v23, 1 }
 0x107   : > { %v2108_v50 = vsel %vm2094_vm7, %v2075_v20, %v1431_v12  ;;  %v1801_v2 = vsel %vm584_vm1, %v1796_v57, %v1800_v58 }
 0x108   : > { %934 = vrot.lane.b32.xlu0 %v902_v35, %s3811_s10  ;;  %v1545_v40 = vpop.permute.xlu1 %1544  ;;  %v2077_v35 = vsel %vm2061_vm6, %v2044_v29, %v4794_v48  ;;  %v1784_v0 = vor.u32 %v1783_v53, %v1779_v25  ;;  %s3286_s10 = sshll.u32 %s3799_s18, 11 }
 0x109   : > { %v2110_v30 = vsel %vm2094_vm7, %v2077_v35, %v4805_v43 }
 0x10a   : > { %v1543_v28 = vpop.permute.xlu0 %1542  ;;  %1048 = vrot.lane.b32.xlu1 %v3115_v56, %s3809_s8  ;;  %v3666_v56 = vld [vmem:[%s3910_s7 + $0xc8] ss:$0 sps:$4 sm:$0x11]   ;;  %v2143_v12 = vsel %vm2127_vm8, %v2110_v30, %v1545_v40  ;;  %v1928_v40 = vrot.slane %v4822_v39, 1  ;;  %s4939_s7 = sand.u32 1, %s3791_s16  }
 0x10b   : > { %v2141_v63 = vsel %vm2127_vm8, %v2108_v50, %v1543_v28  ;;  %v1786_v16 = vshll.u32 %v3666_v56, 16  ;;  %v1925_v4 = vrot.slane %v3666_v56, 1 }
 0x10c   : > { %1046 = vrot.lane.b32.xlu0 %v3114_v32, %s3809_s8  ;;  %v1817_v44 = vpop.permute.xlu1 %1816  ;;  %v1414_v32 = vsel %vm857_vm0, %v1412_v33, %v1413_v49  ;;  %s2922_s8 = sshll.u32 %s4939_s7, 7 }
 0x10d   : > { %v1788_v48 = vrot.slane %v1786_v16, 1  ;;  %v2176_v41 = vsel %vm2160_vm9, %v2143_v12, %v1817_v44  ;;  %v1926_v33 = vsel %vm857_vm0, %v1924_v26, %v1925_v4 }
 0x10e   : > { %v1815_v55 = vpop.permute.xlu0 %1814  ;;  %1320 = vrot.lane.b32.xlu1 %v1289_v61, %s3813_s26 }
 0x10f   : > { %v2174_v37 = vsel %vm2160_vm9, %v2141_v63, %v1815_v55  ;;  %v1789_v28 = vsel %vm584_vm1, %v1784_v0, %v1788_v48 }
 0x110   : > { %1318 = vrot.lane.b32.xlu0 %v1277_v46, %s3813_s26  ;;  %v794_v59 = vpop.permute.xlu1 %793  ;;  %s4983_s26 = scalar_lea.hbm %s5112_s2, %s3286_s10 }
 0x111   : > { %v1980_v46 = vsel %vm1962_vm3, %v4246_v6, %v794_v59 }
 0x112   : > { %v1943_v9 = vpop.permute.xlu0 %1942  ;;  %1448 = vrot.lane.b32.xlu1 %v1417_v13, %s3810_s9 }
 0x113   : > { %v2207_v1 = vsel %vm2193_vm10, %v2174_v37, %v1943_v9 }
 0x114   : > { %1446 = vrot.lane.b32.xlu0 %v1414_v32, %s3810_s9  ;;  %3419 = vmatprep.mubr.msk.bf16.mxu0 %vm2246_vm11, %v2207_v1  ;;  %v796_v52 = vpop.permute.xlu1 %795  ;;  %s4956_s9 = scalar_lea.vmem [#allocation2], %s2922_s8 }
 0x115   : > { %v1982_v20 = vsel %vm1962_vm3, %v4263_v24, %v796_v52  ;;  %s2737_s12 = sshll.u32 %s4956_s9, 4  ;;  %s4985_s12 = int_to_ptr.vmem [resolvable:$true] %s2737_s12 }
 0x116   : > { %v1945_v17 = vpop.permute.xlu0 %1944  ;;  %1560 = vrot.lane.b32.xlu1 %v3163_v34, %s3814_s29  ;;  %v1929_v34 = vsel %vm857_vm0, %v1927_v21, %v1928_v40 }
 0x117   : > { %v2209_v43 = vsel %vm2193_vm10, %v2176_v41, %v1945_v17 }
 0x118   : > { %1558 = vrot.lane.b32.xlu0 %v3162_v42, %s3814_s29  ;;  %3420 = vmatmul.mubr.msk.bf16.gmra.mrb[12].mxu0 %vm2246_vm11, %v2209_v43  ;;  %v925_v36 = vpop.permute.xlu1 %924  ;;  %s2713_s29 = scalar_lea.sflag [#allocation3], %s4939_s7 }
 0x119   : > { %v2015_v32 = vsel %vm1995_vm4, %v1982_v20, %v925_v36 }
 0x11a   : > { %v923_v45 = vpop.permute.xlu0 %922  ;;  %1832 = vrot.lane.b32.xlu1 %v1801_v2, %s3815_s30 }
 0x11b   : > { %v2013_v56 = vsel %vm1995_vm4, %v1980_v46, %v923_v45 }
 0x11c   : > { %1830 = vrot.lane.b32.xlu0 %v1789_v28, %s3815_s30  ;;  %v1037_v42 = vpop.permute.xlu1 %1036  ;;  %s3669_s30 = scalar_lea.vmem %s4985_s12, 2048 }
 0x11d   : > { %v2048_v6 = vsel %vm2028_vm5, %v2015_v32, %v1037_v42  ;;  %p3670_p12 = scmp.ne.s32.totalorder %s4985_s12, %s3669_s30 }
 0x11e   : > { %v1035_v49 = vpop.permute.xlu0 %1034  ;;  %1960 = vrot.lane.b32.xlu1 %v1929_v34, %s3816_s5 }
 0x11f   : > { %v2046_v60 = vsel %vm2028_vm5, %v2013_v56, %v1035_v49  ;;  %p3671_p13 = pnand %p3670_p12, %p3888_p4 }
 0x120   : > { %1958 = vrot.lane.b32.xlu0 %v1926_v33, %s3816_s5  ;;  %v1309_v39 = vpop.permute.xlu1 %1308  ;;  %s3817_s5 = smov [#allocation2]  }
 0x121   : > { %v2081_v25 = vsel %vm2061_vm6, %v2048_v6, %v1309_v39  ;;  %p3672_p0 = pneg %p3671_p13  ;;  %s3673_s6 = sshll.u32 %s3817_s5, 4  ;;  %s3674_s6 = int_to_ptr.vmem [resolvable:$false] %s3673_s6 }
 0x122   : > { %v1307_v19 = vpop.permute.xlu0 %1306  ;;  %s3675_s11 = scalar_lea.vmem %s3674_s6, 4096  ;;  %p3676_p1 = scmp.lt.s32.totalorder %s4985_s12, %s3674_s6 }
 0x123   : > { %v2079_v31 = vsel %vm2061_vm6, %v2046_v60, %v1307_v19  ;;  %p3677_p2 = scmp.lt.s32.totalorder %s3675_s11, %s3669_s30 }
 0x124   : > { %v1437_v61 = vpop.permute.xlu1 %1436 }
 0x125   : > { %v2114_v63 = vsel %vm2094_vm7, %v2081_v25, %v1437_v61  ;;  %p3678_p3 = por %p3677_p2, %p3676_p1 }
 0x126   : > { %v1435_v10 = vpop.permute.xlu0 %1434 }
 0x127   : > { %v2112_v13 = vsel %vm2094_vm7, %v2079_v31, %v1435_v10  ;;  %p3679_p5 = pnand %p3678_p3, %p3672_p0 }
 0x128   : > { %v1549_v54 = vpop.permute.xlu1 %1548 }
 0x129   : > { %v2147_v24 = vsel %vm2127_vm8, %v2114_v63, %v1549_v54 }
 0x12a   : > { %v1547_v44 = vpop.permute.xlu0 %1546 }
 0x12b   : > { %v2145_v3 = vsel %vm2127_vm8, %v2112_v13, %v1547_v44 }
 0x12c   : > { %v1821_v23 = vpop.permute.xlu1 %1820 }
 0x12d   : > { %v2180_v53 = vsel %vm2160_vm9, %v2147_v24, %v1821_v23 }
 0x12e   : > { %v1819_v55 = vpop.permute.xlu0 %1818 }
 0x12f   : > { %v2178_v50 = vsel %vm2160_vm9, %v2145_v3, %v1819_v55 }
 0x130   : > { %v798_v5 = vpop.permute.xlu1 %797 }
 0x131   : > { %v1984_v12 = vsel %vm1962_vm3, %v4389_v7, %v798_v5 }
 0x132   : > { %v1947_v14 = vpop.permute.xlu0 %1946 }
 0x133   : > { %v2211_v27 = vsel %vm2193_vm10, %v2178_v50, %v1947_v14 }
 0x134   : > { %3423 = vmatprep.mubr.msk.bf16.mxu1 %vm2246_vm11, %v2211_v27  ;;  %v800_v59 = vpop.permute.xlu1 %799 }
 0x135   : > { %v1986_v17 = vsel %vm1962_vm3, %v4413_v38, %v800_v59 }
 0x136   : > { %v1949_v16 = vpop.permute.xlu0 %1948 }
 0x137   : > { %v2213_v15 = vsel %vm2193_vm10, %v2180_v53, %v1949_v16 }
 0x138   : > { %3424 = vmatmul.mubr.msk.bf16.vlgmr.msra.gmra.mrb[0].mxu1 %vm2246_vm11, %v2213_v15  ;;  %v929_v29 = vpop.permute.xlu1 %928 }
 0x139   : > { %v2019_v2 = vsel %vm1995_vm4, %v1986_v17, %v929_v29 }
 0x13a   : > { %v927_v37 = vpop.permute.xlu0 %926 }
 0x13b   : > { %v2017_v52 = vsel %vm1995_vm4, %v1984_v12, %v927_v37 }
 0x13c   : > { %v1041_v9 = vpop.permute.xlu1 %1040 }
 0x13d   : > { %v2052_v7 = vsel %vm2028_vm5, %v2019_v2, %v1041_v9 }
 0x13e   : > { %v1039_v51 = vpop.permute.xlu0 %1038 }
 0x13f   : > { %v2050_v48 = vsel %vm2028_vm5, %v2017_v52, %v1039_v51 }
 0x140   : > { %v1313_v35 = vpop.permute.xlu1 %1312 }
 0x141   : > { %v2085_v26 = vsel %vm2061_vm6, %v2052_v7, %v1313_v35 }
 0x142   : > { %v1311_v1 = vpop.permute.xlu0 %1310 }
 0x143   : > { %v2083_v41 = vsel %vm2061_vm6, %v2050_v48, %v1311_v1 }
 0x144   : > { %v1441_v30 = vpop.permute.xlu1 %1440 }
 0x145   : > { %v2118_v45 = vsel %vm2094_vm7, %v2085_v26, %v1441_v30 }
 0x146   : > { %v1439_v57 = vpop.permute.xlu0 %1438 }
 0x147   : > { %v2116_v43 = vsel %vm2094_vm7, %v2083_v41, %v1439_v57 }
 0x148   : > { %v1553_v58 = vpop.permute.xlu1 %1552 }
 0x149   : > { %v2151_v38 = vsel %vm2127_vm8, %v2118_v45, %v1553_v58 }
 0x14a   : > { %v1551_v22 = vpop.permute.xlu0 %1550 }
 0x14b   : > { %v2149_v21 = vsel %vm2127_vm8, %v2116_v43, %v1551_v22 }
 0x14c   : > { %v1825_v0 = vpop.permute.xlu1 %1824 }
 0x14d   : > { %v2184_v42 = vsel %vm2160_vm9, %v2151_v38, %v1825_v0 }
 0x14e   : > { %v1823_v18 = vpop.permute.xlu0 %1822 }
 0x14f   : > { %v2182_v36 = vsel %vm2160_vm9, %v2149_v21, %v1823_v18 }
 0x150   : > { %v802_v40 = vpop.permute.xlu1 %801 }
 0x151   : > { %v1988_v55 = vsel %vm1962_vm3, %v4537_v11, %v802_v40 }
 0x152   : > { %v1951_v28 = vpop.permute.xlu0 %1950 }
 0x153   : > { %v2215_v4 = vsel %vm2193_vm10, %v2182_v36, %v1951_v28 }
 0x154   : > { %3427 = vmatprep.mubr.msk.bf16.mxu1 %vm2246_vm11, %v2215_v4  ;;  %v804_v34 = vpop.permute.xlu1 %803 }
 0x155   : > { %v1990_v5 = vsel %vm1962_vm3, %v4566_v8, %v804_v34 }
 0x156   : > { %v1953_v33 = vpop.permute.xlu0 %1952 }
 0x157   : > { %v2217_v49 = vsel %vm2193_vm10, %v2184_v42, %v1953_v33 }
 0x158   : > { %3428 = vmatmul.mubr.msk.bf16.gmra.mrb[4].mxu1 %vm2246_vm11, %v2217_v49  ;;  %v933_v39 = vpop.permute.xlu1 %932 }
 0x159   : > { %v2023_v50 = vsel %vm1995_vm4, %v1990_v5, %v933_v39 }
 0x15a   : > { %v931_v19 = vpop.permute.xlu0 %930 }
 0x15b   : > { %v2021_v31 = vsel %vm1995_vm4, %v1988_v55, %v931_v19 }
 0x15c   : > { %v1045_v61 = vpop.permute.xlu1 %1044 }
 0x15d   : > { %v2056_v11 = vsel %vm2028_vm5, %v2023_v50, %v1045_v61 }
 0x15e   : > { %v1043_v10 = vpop.permute.xlu0 %1042 }
 0x15f   : > { %v2054_v13 = vsel %vm2028_vm5, %v2021_v31, %v1043_v10 }
 0x160   : > { %v1317_v54 = vpop.permute.xlu1 %1316 }
 0x161   : > { %v2089_v24 = vsel %vm2061_vm6, %v2056_v11, %v1317_v54 }
 0x162   : > { %v1315_v44 = vpop.permute.xlu0 %1314 }
 0x163   : > { %v2087_v3 = vsel %vm2061_vm6, %v2054_v13, %v1315_v44 }
 0x164   : > { %v1445_v46 = vpop.permute.xlu1 %1444 }
 0x165   : > { %v2122_v53 = vsel %vm2094_vm7, %v2089_v24, %v1445_v46 }
 0x166   : > { %v1443_v56 = vpop.permute.xlu0 %1442 }
 0x167   : > { %v2120_v6 = vsel %vm2094_vm7, %v2087_v3, %v1443_v56 }
 0x168   : > { %v1557_v23 = vpop.permute.xlu1 %1556 }
 0x169   : > { %v2155_v8 = vsel %vm2127_vm8, %v2122_v53, %v1557_v23 }
 0x16a   : > { %v1555_v60 = vpop.permute.xlu0 %1554 }
 0x16b   : > { %v2153_v14 = vsel %vm2127_vm8, %v2120_v6, %v1555_v60 }
 0x16c   : > { %v1829_v20 = vpop.permute.xlu1 %1828 }
 0x16d   : > { %v2188_v15 = vsel %vm2160_vm9, %v2155_v8, %v1829_v20 }
 0x16e   : > { %v1827_v32 = vpop.permute.xlu0 %1826 }
 0x16f   : > { %v2186_v27 = vsel %vm2160_vm9, %v2153_v14, %v1827_v32 }
 0x170   : > { %v806_v25 = vpop.permute.xlu1 %805 }
 0x171   : > { %v1992_v52 = vsel %vm1962_vm3, %v4690_v62, %v806_v25 }
 0x172   : > { %v1955_v63 = vpop.permute.xlu0 %1954 }
 0x173   : > { %v2219_v59 = vsel %vm2193_vm10, %v2186_v27, %v1955_v63 }
 0x174   : > { %3431 = vmatprep.mubr.msk.bf16.mxu1 %vm2246_vm11, %v2219_v59  ;;  %v808_v16 = vpop.permute.xlu1 %807 }
 0x175   : > { %v1994_v0 = vsel %vm1962_vm3, %v4719_v47, %v808_v16 }
 0x176   : > { %v1957_v29 = vpop.permute.xlu0 %1956 }
 0x177   : > { %v2221_v37 = vsel %vm2193_vm10, %v2188_v15, %v1957_v29 }
 0x178   : > { %3432 = vmatmul.mubr.msk.bf16.gmra.mrb[8].mxu1 %vm2246_vm11, %v2221_v37  ;;  %v937_v9 = vpop.permute.xlu1 %936 }
 0x179   : > { %v2027_v18 = vsel %vm1995_vm4, %v1994_v0, %v937_v9 }
 0x17a   : > { %v935_v51 = vpop.permute.xlu0 %934 }
 0x17b   : > { %v2025_v41 = vsel %vm1995_vm4, %v1992_v52, %v935_v51 }
 0x17c   : > { %v1049_v35 = vpop.permute.xlu1 %1048 }
 0x17d   : > { %v2060_v43 = vsel %vm2028_vm5, %v2027_v18, %v1049_v35 }
 0x17e   : > { %v1047_v1 = vpop.permute.xlu0 %1046 }
 0x17f   : > { %v2058_v2 = vsel %vm2028_vm5, %v2025_v41, %v1047_v1 }
 0x180   : > { %v1321_v30 = vpop.permute.xlu1 %1320 }
 0x181   : > { %v2093_v40 = vsel %vm2061_vm6, %v2060_v43, %v1321_v30 }
 0x182   : > { %v1319_v57 = vpop.permute.xlu0 %1318 }
 0x183   : > { %v2091_v7 = vsel %vm2061_vm6, %v2058_v2, %v1319_v57 }
 0x184   : > { %v1449_v58 = vpop.permute.xlu1 %1448 }
 0x185   : > { %v2126_v47 = vsel %vm2094_vm7, %v2093_v40, %v1449_v58 }
 0x186   : > { %v1447_v22 = vpop.permute.xlu0 %1446 }
 0x187   : > { %v2124_v28 = vsel %vm2094_vm7, %v2091_v7, %v1447_v22 }
 0x188   : > { %v1561_v12 = vpop.permute.xlu1 %1560 }
 0x189   : > { %v2159_v49 = vsel %vm2127_vm8, %v2126_v47, %v1561_v12 }
 0x18a   : > { %v1559_v48 = vpop.permute.xlu0 %1558 }
 0x18b   : > { %v3409_v17 = vpop.f32.mrb[0].mxu0  ;;  %v2157_v39 = vsel %vm2127_vm8, %v2124_v28, %v1559_v48 }
 0x18c   : > { %v2317_v21 = vpop.f32.mrb[1].mxu0  ;;  %v1833_v36 = vpop.permute.xlu1 %1832  ;;  %v2644_v19 = vmul.f32 %v3409_v17, %v3409_v17 }
 0x18d   : > { %v3410_v62 = vpop.f32.mrb[2].mxu0  ;;  %v2642_v38 = vmul.f32 %v2317_v21, %v2317_v21  ;;  %v2192_v61 = vsel %vm2160_vm9, %v2159_v49, %v1833_v36 }
 0x18e   : > { %v3295_v26 = vpack.c.bf16 %v3410_v62, %v3409_v17  ;;  %v2320_v4 = vpop.f32.mrb[3].mxu0  ;;  %v1831_v45 = vpop.permute.xlu0 %1830  ;;  %v2645_v60 = vmul.f32 %v3410_v62, %v3410_v62 }
 0x18f   : > { %v3290_v34 = vpack.c.bf16 %v2320_v4, %v2317_v21  ;;  %v2604_v42 = vadd.f32 %v2320_v4, %v2317_v21  ;;  %v2643_v33 = vmul.f32 %v2320_v4, %v2320_v4  ;;  %v2190_v46 = vsel %vm2160_vm9, %v2157_v39, %v1831_v45 }
 0x190   : > { %3367 = vst [vmem:[%s4956_s9 + $0x8] sm:$0xff] %v3295_v26   ;;  %v1961_v44 = vpop.permute.xlu1 %1960 }
 0x191   : > { %3291 = vst [vmem:[%s4956_s9] sm:$0xff] %v3290_v34   ;;  %v2605_v10 = vadd.f32 %v3409_v17, %v2604_v42  ;;  %v2674_v54 = vadd.f32 %v2643_v33, %v2642_v38  ;;  %v2225_v56 = vsel %vm2193_vm10, %v2192_v61, %v1961_v44 }
 0x192   : > { %v1959_v23 = vpop.permute.xlu0 %1958 }
 0x193   : > { %v2675_v55 = vadd.f32 %v2674_v54, %v2644_v19  ;;  %v2223_v31 = vsel %vm2193_vm10, %v2190_v46, %v1959_v23  ;;  %v2606_v20 = vadd.f32 %v3410_v62, %v2605_v10 }
 0x194   : > { %3435 = vmatprep.mubr.msk.bf16.mxu1 %vm2246_vm11, %v2223_v31 }
 0x195   : > { %3436 = vmatmul.mubr.msk.bf16.gmra.mrb[12].mxu1 %vm2246_vm11, %v2225_v56  ;;  %v2676_v13 = vadd.f32 %v2675_v55, %v2645_v60 }
 0x1ab   : > { %v3413_v32 = vpop.f32.mrb[4].mxu0 }
 0x1ac   : > { %v2333_v3 = vpop.f32.mrb[5].mxu0  ;;  %v2648_v59 = vmul.f32 %v3413_v32, %v3413_v32 }
 0x1ad   : > { %v2607_v5 = vadd.f32 %v2606_v20, %v2333_v3  ;;  %v2646_v6 = vmul.f32 %v2333_v3, %v2333_v3  ;;  %v3414_v50 = vpop.f32.mrb[6].mxu0 }
 0x1ae   : > { %v3305_v14 = vpack.c.bf16 %v3414_v50, %v3413_v32  ;;  %v2336_v25 = vpop.f32.mrb[7].mxu0  ;;  %v2649_v16 = vmul.f32 %v3414_v50, %v3414_v50 }
 0x1af   : > { %v2677_v11 = vadd.f32 %v2676_v13, %v2646_v6  ;;  %v3300_v27 = vpack.c.bf16 %v2336_v25, %v2333_v3  ;;  %v2608_v63 = vadd.f32 %v2607_v5, %v2336_v25  ;;  %v2647_v24 = vmul.f32 %v2336_v25, %v2336_v25 }
 0x1b0   : > { %3369 = vst [vmem:[%s4956_s9 + $0x18] sm:$0xff] %v3305_v14  }
 0x1b1   : > { %3368 = vst [vmem:[%s4956_s9 + $0x10] sm:$0xff] %v3300_v27   ;;  %v2609_v53 = vadd.f32 %v3413_v32, %v2608_v63  ;;  %v2678_v8 = vadd.f32 %v2677_v11, %v2647_v24 }
 0x1b3   : > { %v2679_v15 = vadd.f32 %v2678_v8, %v2648_v59  ;;  %v2610_v29 = vadd.f32 %v3414_v50, %v2609_v53 }
 0x1b5   : > { %v2680_v37 = vadd.f32 %v2679_v15, %v2649_v16 }
 0x1cb   : > { %v3417_v9 = vpop.f32.mrb[8].mxu0 }
 0x1cc   : > { %v2349_v51 = vpop.f32.mrb[9].mxu0  ;;  %v2652_v48 = vmul.f32 %v3417_v9, %v3417_v9 }
 0x1cd   : > { %v2611_v35 = vadd.f32 %v2610_v29, %v2349_v51  ;;  %v2650_v1 = vmul.f32 %v2349_v51, %v2349_v51  ;;  %v3418_v30 = vpop.f32.mrb[10].mxu0 }
 0x1ce   : > { %v3315_v57 = vpack.c.bf16 %v3418_v30, %v3417_v9  ;;  %v2352_v58 = vpop.f32.mrb[11].mxu0  ;;  %v2653_v17 = vmul.f32 %v3418_v30, %v3418_v30 }
 0x1cf   : > { %v2681_v22 = vadd.f32 %v2680_v37, %v2650_v1  ;;  %v3310_v12 = vpack.c.bf16 %v2352_v58, %v2349_v51  ;;  %v2612_v52 = vadd.f32 %v2611_v35, %v2352_v58  ;;  %v2651_v0 = vmul.f32 %v2352_v58, %v2352_v58 }
 0x1d0   : > { %3371 = vst [vmem:[%s4956_s9 + $0x28] sm:$0xff] %v3315_v57  }
 0x1d1   : > { %3370 = vst [vmem:[%s4956_s9 + $0x20] sm:$0xff] %v3310_v12   ;;  %v2613_v18 = vadd.f32 %v3417_v9, %v2612_v52  ;;  %v2682_v41 = vadd.f32 %v2681_v22, %v2651_v0 }
 0x1d3   : > { %v2683_v43 = vadd.f32 %v2682_v41, %v2652_v48  ;;  %v2614_v2 = vadd.f32 %v3418_v30, %v2613_v18 }
 0x1d5   : > { %v2684_v21 = vadd.f32 %v2683_v43, %v2653_v17 }
 0x1eb   : > { %v3421_v40 = vpop.f32.mrb[12].mxu0 }
 0x1ec   : > { %v2365_v7 = vpop.f32.mrb[13].mxu0  ;;  %v2656_v42 = vmul.f32 %v3421_v40, %v3421_v40 }
 0x1ed   : > { %v2615_v62 = vadd.f32 %v2614_v2, %v2365_v7  ;;  %v2654_v36 = vmul.f32 %v2365_v7, %v2365_v7  ;;  %v3422_v47 = vpop.f32.mrb[14].mxu0 }
 0x1ee   : > { %v3325_v28 = vpack.c.bf16 %v3422_v47, %v3421_v40  ;;  %v2368_v26 = vpop.f32.mrb[15].mxu0  ;;  %v2657_v39 = vmul.f32 %v3422_v47, %v3422_v47 }
 0x1ef   : > { %v2685_v4 = vadd.f32 %v2684_v21, %v2654_v36  ;;  %v3320_v45 = vpack.c.bf16 %v2368_v26, %v2365_v7  ;;  %v2616_v38 = vadd.f32 %v2615_v62, %v2368_v26  ;;  %v2655_v34 = vmul.f32 %v2368_v26, %v2368_v26 }
 0x1f0   : > { %3373 = vst [vmem:[%s4956_s9 + $0x38] sm:$0xff] %v3325_v28  }
 0x1f1   : > { %3372 = vst [vmem:[%s4956_s9 + $0x30] sm:$0xff] %v3320_v45   ;;  %v2617_v33 = vadd.f32 %v3421_v40, %v2616_v38  ;;  %v2686_v49 = vadd.f32 %v2685_v4, %v2655_v34 }
 0x1f3   : > { %v2687_v19 = vadd.f32 %v2686_v49, %v2656_v42  ;;  %v2618_v61 = vadd.f32 %v3422_v47, %v2617_v33 }
 0x1f5   : > { %v2688_v10 = vadd.f32 %v2687_v19, %v2657_v39 }
 0x20b   : > { %v3425_v54 = vpop.f32.mrb[0].mxu1 }
 0x20c   : > { %v2381_v44 = vpop.f32.mrb[1].mxu1  ;;  %v2660_v3 = vmul.f32 %v3425_v54, %v3425_v54 }
 0x20d   : > { %v2619_v46 = vadd.f32 %v2618_v61, %v2381_v44  ;;  %v2658_v56 = vmul.f32 %v2381_v44, %v2381_v44  ;;  %v3426_v23 = vpop.f32.mrb[2].mxu1 }
 0x20e   : > { %v3335_v60 = vpack.c.bf16 %v3426_v23, %v3425_v54  ;;  %v2384_v55 = vpop.f32.mrb[3].mxu1  ;;  %v2661_v50 = vmul.f32 %v3426_v23, %v3426_v23 }
 0x20f   : > { %v2689_v31 = vadd.f32 %v2688_v10, %v2658_v56  ;;  %v3330_v20 = vpack.c.bf16 %v2384_v55, %v2381_v44  ;;  %v2620_v13 = vadd.f32 %v2619_v46, %v2384_v55  ;;  %v2659_v32 = vmul.f32 %v2384_v55, %v2384_v55 }
 0x210   : > { %3375 = vst [vmem:[%s4956_s9 + $0x48] sm:$0xff] %v3335_v60  }
 0x211   : > { %3374 = vst [vmem:[%s4956_s9 + $0x40] sm:$0xff] %v3330_v20   ;;  %v2621_v5 = vadd.f32 %v3425_v54, %v2620_v13  ;;  %v2690_v6 = vadd.f32 %v2689_v31, %v2659_v32 }
 0x213   : > { %v2691_v14 = vadd.f32 %v2690_v6, %v2660_v3  ;;  %v2622_v25 = vadd.f32 %v3426_v23, %v2621_v5 }
 0x215   : > { %v2692_v11 = vadd.f32 %v2691_v14, %v2661_v50 }
 0x22b   : > { %v3429_v27 = vpop.f32.mrb[4].mxu1 }
 0x22c   : > { %v2397_v63 = vpop.f32.mrb[5].mxu1  ;;  %v2664_v51 = vmul.f32 %v3429_v27, %v3429_v27 }
 0x22d   : > { %v2623_v24 = vadd.f32 %v2622_v25, %v2397_v63  ;;  %v2662_v59 = vmul.f32 %v2397_v63, %v2397_v63  ;;  %v3430_v53 = vpop.f32.mrb[6].mxu1 }
 0x22e   : > { %v3345_v8 = vpack.c.bf16 %v3430_v53, %v3429_v27  ;;  %v2400_v16 = vpop.f32.mrb[7].mxu1  ;;  %v2665_v30 = vmul.f32 %v3430_v53, %v3430_v53 }
 0x22f   : > { %v2693_v15 = vadd.f32 %v2692_v11, %v2662_v59  ;;  %v3340_v29 = vpack.c.bf16 %v2400_v16, %v2397_v63  ;;  %v2624_v37 = vadd.f32 %v2623_v24, %v2400_v16  ;;  %v2663_v9 = vmul.f32 %v2400_v16, %v2400_v16 }
 0x230   : > { %3377 = vst [vmem:[%s4956_s9 + $0x58] sm:$0xff] %v3345_v8  }
 0x231   : > { %3376 = vst [vmem:[%s4956_s9 + $0x50] sm:$0xff] %v3340_v29   ;;  %v2625_v35 = vadd.f32 %v3429_v27, %v2624_v37  ;;  %v2694_v1 = vadd.f32 %v2693_v15, %v2663_v9 }
 0x233   : > { %v2695_v57 = vadd.f32 %v2694_v1, %v2664_v51  ;;  %v2626_v58 = vadd.f32 %v3430_v53, %v2625_v35 }
 0x235   : > { %v2696_v22 = vadd.f32 %v2695_v57, %v2665_v30 }
 0x24b   : > { %v3433_v12 = vpop.f32.mrb[8].mxu1 }
 0x24c   : > { %v2413_v52 = vpop.f32.mrb[9].mxu1  ;;  %v2668_v7 = vmul.f32 %v3433_v12, %v3433_v12 }
 0x24d   : > { %v2627_v0 = vadd.f32 %v2626_v58, %v2413_v52  ;;  %v2666_v48 = vmul.f32 %v2413_v52, %v2413_v52  ;;  %v3434_v18 = vpop.f32.mrb[10].mxu1 }
 0x24e   : > { %v3355_v41 = vpack.c.bf16 %v3434_v18, %v3433_v12  ;;  %v2416_v17 = vpop.f32.mrb[11].mxu1  ;;  %v2669_v47 = vmul.f32 %v3434_v18, %v3434_v18 }
 0x24f   : > { %v2697_v43 = vadd.f32 %v2696_v22, %v2666_v48  ;;  %v3350_v2 = vpack.c.bf16 %v2416_v17, %v2413_v52  ;;  %v2628_v21 = vadd.f32 %v2627_v0, %v2416_v17  ;;  %v2667_v40 = vmul.f32 %v2416_v17, %v2416_v17 }
 0x250   : > { %3379 = vst [vmem:[%s4956_s9 + $0x68] sm:$0xff] %v3355_v41  }
 0x251   : > { %3378 = vst [vmem:[%s4956_s9 + $0x60] sm:$0xff] %v3350_v2   ;;  %v2629_v62 = vadd.f32 %v3433_v12, %v2628_v21  ;;  %v2698_v36 = vadd.f32 %v2697_v43, %v2667_v40 }
 0x253   : > { %v2699_v28 = vadd.f32 %v2698_v36, %v2668_v7  ;;  %v2630_v26 = vadd.f32 %v3434_v18, %v2629_v62 }
 0x255   : > { %v2700_v4 = vadd.f32 %v2699_v28, %v2669_v47 }
 0x268   : > { %v3437_v45 = vpop.f32.mrb[12].mxu1 }
 0x269   : > { %v2429_v38 = vpop.f32.mrb[13].mxu1  ;;  %v2672_v44 = vmul.f32 %v3437_v45, %v3437_v45 }
 0x26a   : > { %v2631_v34 = vadd.f32 %v2630_v26, %v2429_v38  ;;  %v2670_v42 = vmul.f32 %v2429_v38, %v2429_v38  ;;  %v3438_v33 = vpop.f32.mrb[14].mxu1 }
 0x26b   : > { %v3365_v49 = vpack.c.bf16 %v3438_v33, %v3437_v45  ;;  %v2432_v39 = vpop.f32.mrb[15].mxu1 }
 0x26c   : > { %v2701_v19 = vadd.f32 %v2700_v4, %v2670_v42  ;;  %v3360_v61 = vpack.c.bf16 %v2432_v39, %v2429_v38  ;;  %v2632_v10 = vadd.f32 %v2631_v34, %v2432_v39  ;;  %v2671_v54 = vmul.f32 %v2432_v39, %v2432_v39 }
 0x26d   : > { %3381 = vst [vmem:[%s4956_s9 + $0x78] sm:$0xff] %v3365_v49  }
 0x26e   : > { %3380 = vst [vmem:[%s4956_s9 + $0x70] sm:$0xff] %v3360_v61   ;;  %v2633_v46 = vadd.f32 %v3437_v45, %v2632_v10  ;;  %v2702_v56 = vadd.f32 %v2701_v19, %v2671_v54 }
 0x26f   : > { %3682 = shalt.err (!%p3679_p5)
}
 0x270   : > { %s3683_s8 = scalar_lea.hbm %s4983_s26, 2048  ;;  %s3687_s14 = scalar_lea.hbm %s5112_s2, 4096 }
 0x271   : > { %p3684_p6 = scmp.ne.s32.totalorder %s4983_s26, %s3683_s8  ;;  %p3688_p10 = scmp.lt.u32.totalorder %s4983_s26, %s5112_s2 }
 0x272   : > { %p3689_p11 = scmp.lt.u32.totalorder %s3687_s14, %s3683_s8  ;;  %p3691_p13 = scmp.lt.u32.totalorder %s3683_s8, %s4983_s26 }
 0x273   : > { %p3685_p7 = pnand %p3684_p6, %p3888_p4 }
 0x274   : > { %p3690_p12 = por %p3689_p11, %p3688_p10 }
 0x275   : > { %p3686_p9 = pneg %p3685_p7 }
 0x276   : > { %p3692_p0 = por %p3691_p13, %p3690_p12 }
 0x278   : > { %p3693_p1 = pnand %p3692_p0, %p3686_p9 }
 0x27a   : > { %3696 = shalt.err (!%p3693_p1)
}
 0x27b   : > { %s3818_s30 = smov 64   ;;  %v2673_v23 = vmul.f32 %v3438_v33, %v3438_v33  ;;  %v2634_v60 = vadd.f32 %v3438_v33, %v2633_v46  ;;  %v2703_v55 = vadd.f32 %v2702_v56, %v2672_v44  ;;  %s5016_s6 = sand.u32 1, %s2916_s21  }
 0x27c   : > { %3448 = dma.vmem_to_hbm [thread:$0]  (%p3888_p4), %s4985_s12, 2048, %s4983_s26, %s2713_s29, %s3818_s30, %s3818_s30, %s3812_s13  }
 0x27d   : > { %v2635_v31 = vrot.slane %v2634_v60, 4  ;;  %v2704_v20 = vadd.f32 %v2703_v55, %v2673_v23  ;;  %s3250_s11 = sshll.u32 %s3799_s18, 4  ;;  %s244_s8 = scalar_lea.vmem [#allocation4], %s4939_s7 }
 0x27e   : > { %s2755_s13 = sshll.u32 %s244_s8, 4  ;;  %s250_s12 = scalar_lea.vmem [#allocation6], %s4939_s7  ;;  %s5028_s13 = int_to_ptr.vmem [resolvable:$true] %s2755_s13 }
 0x27f   : > { %v2636_v13 = vadd.f32 %v2635_v31, %v2634_v60  ;;  %v2705_v32 = vrot.slane %v2704_v20, 4  ;;  %s2770_s26 = sshll.u32 %s250_s12, 4  ;;  %s5026_s10 = scalar_lea.hbm %s5113_s3, %s3250_s11  ;;  %s5035_s26 = int_to_ptr.vmem [resolvable:$true] %s2770_s26 }
 0x280   : > { %s5033_s14 = scalar_lea.hbm %s5114_s4, %s3250_s11  ;;  %s2718_s24 = scalar_lea.sflag [#allocation5], %s5016_s6 }
 0x281   : > { %v2706_v3 = vadd.f32 %v2705_v32, %v2704_v20  ;;  %v2637_v5 = vrot.slane %v2636_v13, 2  ;;  %s3697_s5 = scalar_lea.vmem %s5028_s13, 16  ;;  %s3819_s30 = smov [#allocation4]  }
 0x282   : > { %p3698_p2 = scmp.ne.s32.totalorder %s5028_s13, %s3697_s5  ;;  %s3701_s29 = sshll.u32 %s3819_s30, 4  ;;  %s3702_s29 = int_to_ptr.vmem [resolvable:$false] %s3701_s29 }
 0x283   : > { %v2638_v6 = vadd.f32 %v2637_v5, %v2636_v13  ;;  %v2707_v50 = vrot.slane %v2706_v3, 2  ;;  %s3703_s9 = scalar_lea.vmem %s3702_s29, 32  ;;  %p3704_p6 = scmp.lt.s32.totalorder %s5028_s13, %s3702_s29 }
 0x284   : > { %p3699_p3 = pnand %p3698_p2, %p3888_p4  ;;  %p3705_p7 = scmp.lt.s32.totalorder %s3703_s9, %s3697_s5 }
 0x285   : > { %v2639_v14 = vrot.slane %v2638_v6, 1  ;;  %v2708_v25 = vadd.f32 %v2707_v50, %v2706_v3 }
 0x286   : > { %p3700_p5 = pneg %p3699_p3  ;;  %p3706_p9 = por %p3705_p7, %p3704_p6 }
 0x287   : > { %v2640_v11 = vadd.f32 %v2639_v14, %v2638_v6  ;;  %v2709_v27 = vrot.slane %v2708_v25, 1 }
 0x288   : > { %p3707_p10 = pnand %p3706_p9, %p3700_p5 }
 0x289   : > { %2641 = vst [vmem:[%s244_s8] sm:$0x1] %v2640_v11  ;;  %v2710_v63 = vadd.f32 %v2709_v27, %v2708_v25 }
 0x28a   : > { %3710 = shalt.err (!%p3707_p10)
}
 0x28b   : > { %s3711_s11 = scalar_lea.hbm %s5026_s10, 16  ;;  %s3715_s21 = scalar_lea.hbm %s5113_s3, 32 }
 0x28c   : > { %p3712_p11 = scmp.ne.s32.totalorder %s5026_s10, %s3711_s11  ;;  %p3716_p0 = scmp.lt.u32.totalorder %s5026_s10, %s5113_s3 }
 0x28d   : > { %p3717_p1 = scmp.lt.u32.totalorder %s3715_s21, %s3711_s11  ;;  %p3719_p3 = scmp.lt.u32.totalorder %s3711_s11, %s5026_s10 }
 0x28e   : > { %p3713_p12 = pnand %p3712_p11, %p3888_p4 }
 0x28f   : > { %p3718_p2 = por %p3717_p1, %p3716_p0 }
 0x290   : > { %p3714_p13 = pneg %p3713_p12 }
 0x291   : > { %p3720_p5 = por %p3719_p3, %p3718_p2 }
 0x293   : > { %p3721_p6 = pnand %p3720_p5, %p3714_p13 }
 0x295   : > { %3724 = shalt.err (!%p3721_p6)
}
 0x296   : > { %3449 = dma.vmem_to_hbm [thread:$0]  (%p3888_p4), %s5028_s13, 16, %s5026_s10, %s2718_s24   ;;  %2711 = vst [vmem:[%s250_s12] sm:$0x1] %v2710_v63 }
 0x297   : > { %s3725_s5 = scalar_lea.vmem %s5035_s26, 16  ;;  %s3820_s9 = smov [#allocation6]  }
 0x298   : > { %p3726_p7 = scmp.ne.s32.totalorder %s5035_s26, %s3725_s5  ;;  %s3729_s11 = sshll.u32 %s3820_s9, 4  ;;  %s3730_s11 = int_to_ptr.vmem [resolvable:$false] %s3729_s11 }
 0x299   : > { %s3731_s8 = scalar_lea.vmem %s3730_s11, 32  ;;  %p3732_p11 = scmp.lt.s32.totalorder %s5035_s26, %s3730_s11 }
 0x29a   : > { %p3727_p9 = pnand %p3726_p7, %p3888_p4  ;;  %p3733_p12 = scmp.lt.s32.totalorder %s3731_s8, %s3725_s5 }
 0x29c   : > { %p3728_p10 = pneg %p3727_p9  ;;  %p3734_p13 = por %p3733_p12, %p3732_p11 }
 0x29e   : > { %p3735_p0 = pnand %p3734_p13, %p3728_p10 }
 0x2a0   : > { %3738 = shalt.err (!%p3735_p0)
}
 0x2a1   : > { %s3739_s7 = scalar_lea.hbm %s5033_s14, 16  ;;  %s3743_s10 = scalar_lea.hbm %s5114_s4, 32 }
 0x2a2   : > { %p3740_p1 = scmp.ne.s32.totalorder %s5033_s14, %s3739_s7  ;;  %p3744_p5 = scmp.lt.u32.totalorder %s5033_s14, %s5114_s4 }
 0x2a3   : > { %p3745_p6 = scmp.lt.u32.totalorder %s3743_s10, %s3739_s7  ;;  %p3747_p9 = scmp.lt.u32.totalorder %s3739_s7, %s5033_s14 }
 0x2a4   : > { %p3741_p2 = pnand %p3740_p1, %p3888_p4 }
 0x2a5   : > { %p3746_p7 = por %p3745_p6, %p3744_p5 }
 0x2a6   : > { %p3742_p3 = pneg %p3741_p2 }
 0x2a7   : > { %p3748_p10 = por %p3747_p9, %p3746_p7 }
 0x2a9   : > { %p3749_p11 = pnand %p3748_p10, %p3742_p3 }
 0x2ab   : > { %3752 = shalt.err (!%p3749_p11)
}
 0x2ac   : > { %3450 = dma.vmem_to_hbm [thread:$0]  (%p3888_p4), %s5035_s26, 16, %s5033_s14, %s2718_s24  }
 0x2ad PF: > { %p3464_p12 = scmp.ge.s32.totalorder %s3807_s20, 2  ;;  %s2782_s30 = sand.u32 1, %s3787_s15  }
 0x2ae   : > { %s2783_s29 = scalar_lea.sflag [#allocation3], %s2782_s30 }
 0x2af   : > { %p3455_p13 = pnand %p3464_p12, %p3897_p8 }
 0x2b1   : > { %3778 = dma.done.wait (!%p3455_p13), %s2783_s29, 2048  }
 0x2b2   : > { %3780 = vsyncadd (!%p3455_p13), %s2783_s29, 4294965248  ;;  %s2791_s5 = sand.u32 1, %s2917_s22  }
 0x2b3   : > { %s2792_s25 = scalar_lea.sflag [#allocation5], %s2791_s5 }
 0x2b4   : > { %3782 = dma.done.wait (!%p3455_p13), %s2792_s25, 32  }
 0x2b5   : > { %3784 = vsyncadd (!%p3455_p13), %s2792_s25, 4294967264  ;;  %s21_s20 = sadd.s32 1, %s3807_s20   ;;  %s5117_s15 = smov %s3791_s16 }
 0x2b6   : > { %p18_p4 = scmp.ge.s32.totalorder %s21_s20, 4   ;;  %s5118_s16 = smov %s3795_s17 }
 0x2b7   : > { %s5119_s17 = smov %s3903_s28  ;;  %s5120_s18 = smov %s3803_s19 }
 0x2b8   : > { %s5121_s19 = smov %s5123_s23  ;;  %20 = sbr.rel (!%p18_p4) target bundleno = 6 (0x6), region = 100 }
 0x2bf   :  { %2804 = vsyncpa [#allocation3], 1 }
 0x2c0   :  { %2806 = vsyncpa [#allocation3 + $0x1], 1 }
 0x2c1   :  { %2807 = vsyncpa [#allocation5], 1 }
 0x2c2   :  { %2809 = vsyncpa [#allocation5 + $0x1], 1 }

</bundles_post_ra>
